<compile_context>
chip_gen: v7x
topology: tpu7x:2x2x1
jax: 0.10.0
libtpu: 0.0.40
codegen_flags: <defaults>
</compile_context>

<pallas_src>
import functools

import jax
import jax.numpy as jnp
from jax.experimental import pallas as pl
from jax.experimental.pallas import tpu as pltpu

VMEM_SPEC = pl.BlockSpec(memory_space=pltpu.MemorySpace.VMEM)
LANE = 128


# ----------------------------------------------------------------------------
# Fused forward kernel
# ----------------------------------------------------------------------------
def _rnntp_fused_kernel(*refs, n_layers, n_hidden):
    H = n_hidden
    x_ref, h0_ref, c0_ref, w1t_ref, b1_ref = refs[:5]
    layer_refs = refs[5:5 + 3 * n_layers]
    w2t_ref, b2_ref, y_ref, hn_ref, cn_ref = refs[5 + 3 * n_layers:5 + 3 * n_layers + 5]
    scr_refs = refs[5 + 3 * n_layers + 5:]
    T = x_ref.shape[0]

    # ---- linear1 + ReLU (whole sequence, one MXU matmul) --------------------
    cur = jnp.maximum(
        jnp.dot(x_ref[...], w1t_ref[...], preferred_element_type=jnp.float32)
        + b1_ref[...],
        0.0)                                                       # (T, H)

    # Forward-direction lane mask for the gate-major [i_f i_r f_f f_r o_f o_r g_f g_r]
    # column layout (comparisons only; built once).
    lane = jax.lax.broadcasted_iota(jnp.int32, (T, 8 * H), 1)
    fwd_lane = ((lane < H)
                | ((lane >= 2 * H) & (lane < 3 * H))
                | ((lane >= 4 * H) & (lane < 5 * H))
                | ((lane >= 6 * H) & (lane < 7 * H)))

    # Time-reversal permutation matrix (T, T): hoists the reverse-direction input
    # rearrangement out of the recurrence with one tiny MXU matmul per layer.
    rr = jax.lax.broadcasted_iota(jnp.int32, (T, T), 0)
    cc = jax.lax.broadcasted_iota(jnp.int32, (T, T), 1)
    revP = jnp.where(rr + cc == T - 1, 1.0, 0.0)

    for l in range(n_layers):
        wih_ref, whh_ref, b_ref = layer_refs[3 * l:3 * l + 3]
        out_scr = scr_refs[l]

        # Input projection for BOTH directions of the whole sequence (one matmul).
        xproj = (jnp.dot(cur, wih_ref[...], preferred_element_type=jnp.float32)
                 + b_ref[...])                                     # (T, 8H)
        # Row t of pre_all: fwd-gate lanes from time t, rev-gate lanes from time T-1-t.
        xproj_rev = jnp.dot(revP, xproj, preferred_element_type=jnp.float32)
        pre_all = jnp.where(fwd_lane, xproj, xproj_rev)            # (T, 8H)

        whh = whh_ref[...]                                         # (2H, 8H) block-diag
        h = h0_ref[l:l + 1, :]                                     # (1, 2H) = [h_f | h_r]
        c = c0_ref[l:l + 1, :]                                     # (1, 2H)

        for t in range(T):   # fully unrolled: T is small & static
            gates = pre_all[t:t + 1, :] + jnp.dot(
                h, whh, preferred_element_type=jnp.float32)        # (1, 8H)
            sig = jax.nn.sigmoid(gates[:, :6 * H])                 # i|f|o, both dirs
            g = jnp.tanh(gates[:, 6 * H:])                         # g, both dirs
            i_g = sig[:, 0:2 * H]
            f_g = sig[:, 2 * H:4 * H]
            o_g = sig[:, 4 * H:6 * H]
            c = f_g * c + i_g * g
            h = o_g * jnp.tanh(c)
            # Scratch stores (off the recurrence critical path); rows are time-ordered.
            out_scr[t:t + 1, 0:H] = h[:, 0:H]                      # forward output at t
            out_scr[T - 1 - t:T - t, H:2 * H] = h[:, H:2 * H]      # reverse output at T-1-t

        hn_ref[l:l + 1, :] = h                                     # [h_f | h_r] final
        cn_ref[l:l + 1, :] = c
        cur = out_scr[...]                                         # (T, 2H) next-layer input

    # ---- linear2 (lane-dense padded output) ----------------------------------
    y = jnp.dot(cur, w2t_ref[...], preferred_element_type=jnp.float32) + b2_ref[...]
    y_ref[...] = y.astype(y_ref.dtype)


# ----------------------------------------------------------------------------
# Parameter init (deterministic, PyTorch-like uniform ranges; not a checkpoint)
# ----------------------------------------------------------------------------
def init_rnntp_params(key, n_input, n_output, n_hidden, n_layers=2):
    num_dirs = 2  # bidirectional (module default)
    keys = iter(jax.random.split(key, 64))

    def unif(shape, bound):
        return jax.random.uniform(next(keys), shape, jnp.float32, -bound, bound)

    k1 = 1.0 / jnp.sqrt(n_input)
    k2 = 1.0 / jnp.sqrt(n_hidden * num_dirs)
    kh = 1.0 / jnp.sqrt(n_hidden)

    params = {
        "w1": unif((n_hidden, n_input), k1),
        "b1": unif((n_hidden,), k1),
        "w2": unif((n_output, n_hidden * num_dirs), k2),
        "b2": unif((n_output,), k2),
        "lstm": [],
    }
    for layer in range(n_layers):
        in_size = n_hidden if layer == 0 else n_hidden * num_dirs
        dirs = []
        for _ in range(num_dirs):
            dirs.append({
                "w_ih": unif((4 * n_hidden, in_size), kh),
                "w_hh": unif((4 * n_hidden, n_hidden), kh),
                "b_ih": unif((4 * n_hidden,), kh),
                "b_hh": unif((4 * n_hidden,), kh),
            })
        params["lstm"].append(dirs)
    return params


def _gate_blocks_t(w):
    """(4H, K) PyTorch [i; f; g; o] row blocks -> transposed (K, H) blocks i, f, g, o."""
    H = w.shape[0] // 4
    wt = w.T
    return wt[:, 0:H], wt[:, H:2 * H], wt[:, 2 * H:3 * H], wt[:, 3 * H:4 * H]


def pack_rnntp_params(params):
    """Pre-transpose / pre-pack weights once (outside the hot path).

    LSTM gate columns use a gate-major, direction-minor layout:
        [i_f i_r f_f f_r o_f o_r g_f g_r]  (each block H wide)
    and the recurrent weight is an interleaved block-diagonal (2H, 8H) matrix so the
    per-step recurrence is a single matmul on the flat carry [h_fwd | h_rev].
    """
    H = params["w1"].shape[0]
    n_output = params["w2"].shape[0]
    out_pad = max(LANE, -(-n_output // LANE) * LANE)

    w2t = jnp.zeros((2 * H, out_pad), jnp.float32).at[:, :n_output].set(params["w2"].T)
    b2 = jnp.zeros((1, out_pad), jnp.float32).at[:, :n_output].set(
        params["b2"].reshape(1, -1))

    packed = {
        "w1t": params["w1"].T,                      # (n_input, H)
        "b1": params["b1"].reshape(1, -1),          # (1, H)
        "w2t": w2t,                                 # (2H, out_pad) lane-dense
        "b2": b2,                                   # (1, out_pad)
        "layers": [],
    }
    Z = jnp.zeros((H, H), jnp.float32)
    for dirs in params["lstm"]:
        fwd, rev = dirs[0], dirs[1]

        i_f, f_f, g_f, o_f = _gate_blocks_t(fwd["w_ih"])
        i_r, f_r, g_r, o_r = _gate_blocks_t(rev["w_ih"])
        wih = jnp.concatenate([i_f, i_r, f_f, f_r, o_f, o_r, g_f, g_r], axis=1)  # (in, 8H)

        hi_f, hf_f, hg_f, ho_f = _gate_blocks_t(fwd["w_hh"])
        hi_r, hf_r, hg_r, ho_r = _gate_blocks_t(rev["w_hh"])
        whh = jnp.concatenate([
            jnp.concatenate([hi_f, Z, hf_f, Z, ho_f, Z, hg_f, Z], axis=1),  # rows act on h_fwd
            jnp.concatenate([Z, hi_r, Z, hf_r, Z, ho_r, Z, hg_r], axis=1),  # rows act on h_rev
        ], axis=0)                                                           # (2H, 8H)

        bf = fwd["b_ih"] + fwd["b_hh"]
        br = rev["b_ih"] + rev["b_hh"]
        b = jnp.concatenate([bf[0:H], br[0:H], bf[H:2 * H], br[H:2 * H],
                             bf[3 * H:4 * H], br[3 * H:4 * H],
                             bf[2 * H:3 * H], br[2 * H:3 * H]]).reshape(1, -1)  # (1, 8H)

        packed["layers"].append((wih, whh, b))
    return packed


# ----------------------------------------------------------------------------
# Forward pass (matches RNNTP.forward in inference mode), single pallas_call
# ----------------------------------------------------------------------------
def rnntp_forward(packed, x, h=None, *, n_hidden, n_output, n_layers=2):
    H = n_hidden
    T = x.shape[0]
    out_pad = packed["w2t"].shape[1]

    if h is None:
        h0 = jnp.zeros((n_layers, 2 * H), jnp.float32)
        c0 = jnp.zeros((n_layers, 2 * H), jnp.float32)
    else:
        # PyTorch layout (n_layers*2, 1, H): rows 2l / 2l+1 = layer-l fwd / rev.
        h0 = jnp.reshape(h[0], (n_layers, 2 * H)).astype(jnp.float32)
        c0 = jnp.reshape(h[1], (n_layers, 2 * H)).astype(jnp.float32)

    layer_args = []
    for lp in packed["layers"]:
        layer_args.extend(lp)

    n_in = 5 + 3 * n_layers + 2
    y_pad, hn, cn = pl.pallas_call(
        functools.partial(_rnntp_fused_kernel, n_layers=n_layers, n_hidden=H),
        out_shape=(
            jax.ShapeDtypeStruct((T, out_pad), jnp.float32),
            jax.ShapeDtypeStruct((n_layers, 2 * H), jnp.float32),
            jax.ShapeDtypeStruct((n_layers, 2 * H), jnp.float32),
        ),
        in_specs=[VMEM_SPEC] * n_in,
        out_specs=(VMEM_SPEC, VMEM_SPEC, VMEM_SPEC),
        scratch_shapes=[pltpu.VMEM((T, 2 * H), jnp.float32) for _ in range(n_layers)],
    )(x, h0, c0, packed["w1t"], packed["b1"], *layer_args,
      packed["w2t"], packed["b2"])

    y = y_pad[:, :n_output]
    # Match PyTorch LSTM state shape: (n_layers*2, batch=1, H)
    h_n = jnp.reshape(hn, (2 * n_layers, 1, H))
    c_n = jnp.reshape(cn, (2 * n_layers, 1, H))
    return y, (h_n, c_n)


# ----------------------------------------------------------------------------
if __name__ == "__main__":
    n_input, n_hidden, n_output = 16, 32, 8
    n_layers = 2
    T = 8  # sequence length

    key = jax.random.PRNGKey(0)
    pkey, xkey = jax.random.split(key)
    params = init_rnntp_params(pkey, n_input, n_output, n_hidden, n_layers=n_layers)
    packed = pack_rnntp_params(params)          # pre-transpose / pre-pack weights once
    x = jax.random.normal(xkey, (T, n_input), jnp.float32)

    fwd = jax.jit(functools.partial(rnntp_forward, n_hidden=n_hidden,
                                    n_output=n_output, n_layers=n_layers))
    y, (h_n, c_n) = fwd(packed, x)
    jax.block_until_ready((y, h_n, c_n))

    assert y.shape == (T, n_output)
    assert h_n.shape == (n_layers * 2, 1, n_hidden)
    assert c_n.shape == (n_layers * 2, 1, n_hidden)
    print("KERNEL_OK")
</pallas_src>

<mosaic_0001>
module attributes {stable_mosaic.version = 11 : i64} {
  func.func @_rnntp_fused_kernel(%arg0: memref<8x16xf32, #tpu.memory_space<vmem>>, %arg1: memref<2x64xf32, #tpu.memory_space<vmem>>, %arg2: memref<2x64xf32, #tpu.memory_space<vmem>>, %arg3: memref<16x32xf32, #tpu.memory_space<vmem>>, %arg4: memref<1x32xf32, #tpu.memory_space<vmem>>, %arg5: memref<32x256xf32, #tpu.memory_space<vmem>>, %arg6: memref<64x256xf32, #tpu.memory_space<vmem>>, %arg7: memref<1x256xf32, #tpu.memory_space<vmem>>, %arg8: memref<64x256xf32, #tpu.memory_space<vmem>>, %arg9: memref<64x256xf32, #tpu.memory_space<vmem>>, %arg10: memref<1x256xf32, #tpu.memory_space<vmem>>, %arg11: memref<64x128xf32, #tpu.memory_space<vmem>>, %arg12: memref<1x128xf32, #tpu.memory_space<vmem>>, %arg13: memref<8x128xf32, #tpu.memory_space<vmem>>, %arg14: memref<2x64xf32, #tpu.memory_space<vmem>>, %arg15: memref<2x64xf32, #tpu.memory_space<vmem>>, %arg16: memref<8x64xf32, #tpu.memory_space<vmem>>, %arg17: memref<8x64xf32, #tpu.memory_space<vmem>>) attributes {dimension_semantics = [], scalar_prefetch = 0 : i64, scratch_operands = 2 : i64, tpu.core_type = #tpu.core_type<tc>} {
    %c0 = arith.constant 0 : index
    %c0_0 = arith.constant 0 : index
    %0 = vector.load %arg0[%c0, %c0_0] : memref<8x16xf32, #tpu.memory_space<vmem>>, vector<8x16xf32>
    %c0_1 = arith.constant 0 : index
    %c0_2 = arith.constant 0 : index
    %1 = vector.load %arg3[%c0_1, %c0_2] : memref<16x32xf32, #tpu.memory_space<vmem>>, vector<16x32xf32>
    %cst = arith.constant dense<0.000000e+00> : vector<8x32xf32>
    %2 = tpu.matmul %0, %1, %cst {dimension_numbers = #tpu.dot_dimension_numbers<[1], [0], [0], [1], [0, 0, 1, 1], [], []>} : vector<8x16xf32>, vector<16x32xf32>, vector<8x32xf32> -> vector<8x32xf32>
    %c0_3 = arith.constant 0 : index
    %c0_4 = arith.constant 0 : index
    %3 = vector.load %arg4[%c0_3, %c0_4] : memref<1x32xf32, #tpu.memory_space<vmem>>, vector<1x32xf32>
    %4 = vector.broadcast %3 : vector<1x32xf32> to vector<8x32xf32>
    %5 = arith.addf %2, %4 : vector<8x32xf32>
    %cst_5 = arith.constant 0.000000e+00 : f32
    %6 = vector.broadcast %cst_5 : f32 to vector<8x32xf32>
    %7 = arith.maximumf %5, %6 : vector<8x32xf32>
    %8 = tpu.iota {dimensions = array<i32: 1>} : vector<8x256xi32>
    %c32_i32 = arith.constant 32 : i32
    %9 = vector.broadcast %c32_i32 : i32 to vector<8x256xi32>
    %10 = arith.cmpi slt, %8, %9 : vector<8x256xi32>
    %c64_i32 = arith.constant 64 : i32
    %11 = vector.broadcast %c64_i32 : i32 to vector<8x256xi32>
    %12 = arith.cmpi sge, %8, %11 : vector<8x256xi32>
    %c96_i32 = arith.constant 96 : i32
    %13 = vector.broadcast %c96_i32 : i32 to vector<8x256xi32>
    %14 = arith.cmpi slt, %8, %13 : vector<8x256xi32>
    %15 = arith.andi %12, %14 : vector<8x256xi1>
    %16 = arith.ori %10, %15 : vector<8x256xi1>
    %c128_i32 = arith.constant 128 : i32
    %17 = vector.broadcast %c128_i32 : i32 to vector<8x256xi32>
    %18 = arith.cmpi sge, %8, %17 : vector<8x256xi32>
    %c160_i32 = arith.constant 160 : i32
    %19 = vector.broadcast %c160_i32 : i32 to vector<8x256xi32>
    %20 = arith.cmpi slt, %8, %19 : vector<8x256xi32>
    %21 = arith.andi %18, %20 : vector<8x256xi1>
    %22 = arith.ori %16, %21 : vector<8x256xi1>
    %c192_i32 = arith.constant 192 : i32
    %23 = vector.broadcast %c192_i32 : i32 to vector<8x256xi32>
    %24 = arith.cmpi sge, %8, %23 : vector<8x256xi32>
    %c224_i32 = arith.constant 224 : i32
    %25 = vector.broadcast %c224_i32 : i32 to vector<8x256xi32>
    %26 = arith.cmpi slt, %8, %25 : vector<8x256xi32>
    %27 = arith.andi %24, %26 : vector<8x256xi1>
    %28 = arith.ori %22, %27 : vector<8x256xi1>
    %29 = tpu.iota {dimensions = array<i32: 0>} : vector<8x8xi32>
    %30 = tpu.iota {dimensions = array<i32: 1>} : vector<8x8xi32>
    %31 = arith.addi %29, %30 : vector<8x8xi32>
    %c7_i32 = arith.constant 7 : i32
    %32 = vector.broadcast %c7_i32 : i32 to vector<8x8xi32>
    %33 = arith.cmpi eq, %31, %32 : vector<8x8xi32>
    %cst_6 = arith.constant 1.000000e+00 : f32
    %cst_7 = arith.constant 0.000000e+00 : f32
    %34 = vector.broadcast %cst_6 : f32 to vector<8x8xf32>
    %35 = vector.broadcast %cst_7 : f32 to vector<8x8xf32>
    %36 = arith.select %33, %34, %35 : vector<8x8xi1>, vector<8x8xf32>
    %c0_8 = arith.constant 0 : index
    %c0_9 = arith.constant 0 : index
    %37 = vector.load %arg5[%c0_8, %c0_9] : memref<32x256xf32, #tpu.memory_space<vmem>>, vector<32x256xf32>
    %cst_10 = arith.constant dense<0.000000e+00> : vector<8x256xf32>
    %38 = tpu.matmul %7, %37, %cst_10 {dimension_numbers = #tpu.dot_dimension_numbers<[1], [0], [0], [1], [0, 0, 1, 1], [], []>} : vector<8x32xf32>, vector<32x256xf32>, vector<8x256xf32> -> vector<8x256xf32>
    %c0_11 = arith.constant 0 : index
    %c0_12 = arith.constant 0 : index
    %39 = vector.load %arg7[%c0_11, %c0_12] : memref<1x256xf32, #tpu.memory_space<vmem>>, vector<1x256xf32>
    %40 = vector.broadcast %39 : vector<1x256xf32> to vector<8x256xf32>
    %41 = arith.addf %38, %40 : vector<8x256xf32>
    %cst_13 = arith.constant dense<0.000000e+00> : vector<8x256xf32>
    %42 = tpu.matmul %36, %41, %cst_13 {dimension_numbers = #tpu.dot_dimension_numbers<[1], [0], [0], [1], [0, 0, 1, 1], [], []>} : vector<8x8xf32>, vector<8x256xf32>, vector<8x256xf32> -> vector<8x256xf32>
    %43 = arith.select %28, %41, %42 : vector<8x256xi1>, vector<8x256xf32>
    %c0_14 = arith.constant 0 : index
    %c0_15 = arith.constant 0 : index
    %44 = vector.load %arg6[%c0_14, %c0_15] : memref<64x256xf32, #tpu.memory_space<vmem>>, vector<64x256xf32>
    %c0_16 = arith.constant 0 : index
    %c0_17 = arith.constant 0 : index
    %45 = vector.load %arg1[%c0_16, %c0_17] : memref<2x64xf32, #tpu.memory_space<vmem>>, vector<1x64xf32>
    %c0_18 = arith.constant 0 : index
    %c0_19 = arith.constant 0 : index
    %46 = vector.load %arg2[%c0_18, %c0_19] : memref<2x64xf32, #tpu.memory_space<vmem>>, vector<1x64xf32>
    %47 = vector.extract_strided_slice %43 {offsets = [0, 0], sizes = [1, 256], strides = [1, 1]} : vector<8x256xf32> to vector<1x256xf32>
    %cst_20 = arith.constant dense<0.000000e+00> : vector<1x256xf32>
    %48 = tpu.matmul %45, %44, %cst_20 {dimension_numbers = #tpu.dot_dimension_numbers<[1], [0], [0], [1], [0, 0, 1, 1], [], []>} : vector<1x64xf32>, vector<64x256xf32>, vector<1x256xf32> -> vector<1x256xf32>
    %49 = arith.addf %47, %48 : vector<1x256xf32>
    %50 = vector.extract_strided_slice %49 {offsets = [0, 0], sizes = [1, 192], strides = [1, 1]} : vector<1x256xf32> to vector<1x192xf32>
    %51 = arith.negf %50 : vector<1x192xf32>
    %52 = math.exp %51 : vector<1x192xf32>
    %cst_21 = arith.constant 1.000000e+00 : f32
    %53 = vector.broadcast %cst_21 : f32 to vector<1x192xf32>
    %54 = arith.addf %53, %52 : vector<1x192xf32>
    %55 = arith.divf %53, %54 : vector<1x192xf32>
    %56 = vector.extract_strided_slice %49 {offsets = [0, 192], sizes = [1, 64], strides = [1, 1]} : vector<1x256xf32> to vector<1x64xf32>
    %57 = math.tanh %56 : vector<1x64xf32>
    %58 = vector.extract_strided_slice %55 {offsets = [0, 0], sizes = [1, 64], strides = [1, 1]} : vector<1x192xf32> to vector<1x64xf32>
    %59 = vector.extract_strided_slice %55 {offsets = [0, 64], sizes = [1, 64], strides = [1, 1]} : vector<1x192xf32> to vector<1x64xf32>
    %60 = vector.extract_strided_slice %55 {offsets = [0, 128], sizes = [1, 64], strides = [1, 1]} : vector<1x192xf32> to vector<1x64xf32>
    %61 = arith.mulf %59, %46 : vector<1x64xf32>
    %62 = arith.mulf %58, %57 : vector<1x64xf32>
    %63 = arith.addf %61, %62 : vector<1x64xf32>
    %64 = math.tanh %63 : vector<1x64xf32>
    %65 = arith.mulf %60, %64 : vector<1x64xf32>
    %66 = vector.extract_strided_slice %65 {offsets = [0, 0], sizes = [1, 32], strides = [1, 1]} : vector<1x64xf32> to vector<1x32xf32>
    %c0_22 = arith.constant 0 : index
    %c0_23 = arith.constant 0 : index
    %67 = vector.load %arg16[%c0_22, %c0_23] : memref<8x64xf32, #tpu.memory_space<vmem>>, vector<1x32xf32>
    tpu.vector_store %arg16[%c0_22, %c0_23], %66 {strides = array<i32>} : memref<8x64xf32, #tpu.memory_space<vmem>>, vector<1x32xf32>,
    %68 = vector.extract_strided_slice %65 {offsets = [0, 32], sizes = [1, 32], strides = [1, 1]} : vector<1x64xf32> to vector<1x32xf32>
    %c7 = arith.constant 7 : index
    %c32 = arith.constant 32 : index
    %69 = vector.load %arg16[%c7, %c32] : memref<8x64xf32, #tpu.memory_space<vmem>>, vector<1x32xf32>
    tpu.vector_store %arg16[%c7, %c32], %68 {strides = array<i32>} : memref<8x64xf32, #tpu.memory_space<vmem>>, vector<1x32xf32>,
    %70 = vector.extract_strided_slice %43 {offsets = [1, 0], sizes = [1, 256], strides = [1, 1]} : vector<8x256xf32> to vector<1x256xf32>
    %cst_24 = arith.constant dense<0.000000e+00> : vector<1x256xf32>
    %71 = tpu.matmul %65, %44, %cst_24 {dimension_numbers = #tpu.dot_dimension_numbers<[1], [0], [0], [1], [0, 0, 1, 1], [], []>} : vector<1x64xf32>, vector<64x256xf32>, vector<1x256xf32> -> vector<1x256xf32>
    %72 = arith.addf %70, %71 : vector<1x256xf32>
    %73 = vector.extract_strided_slice %72 {offsets = [0, 0], sizes = [1, 192], strides = [1, 1]} : vector<1x256xf32> to vector<1x192xf32>
    %74 = arith.negf %73 : vector<1x192xf32>
    %75 = math.exp %74 : vector<1x192xf32>
    %cst_25 = arith.constant 1.000000e+00 : f32
    %76 = vector.broadcast %cst_25 : f32 to vector<1x192xf32>
    %77 = arith.addf %76, %75 : vector<1x192xf32>
    %78 = arith.divf %76, %77 : vector<1x192xf32>
    %79 = vector.extract_strided_slice %72 {offsets = [0, 192], sizes = [1, 64], strides = [1, 1]} : vector<1x256xf32> to vector<1x64xf32>
    %80 = math.tanh %79 : vector<1x64xf32>
    %81 = vector.extract_strided_slice %78 {offsets = [0, 0], sizes = [1, 64], strides = [1, 1]} : vector<1x192xf32> to vector<1x64xf32>
    %82 = vector.extract_strided_slice %78 {offsets = [0, 64], sizes = [1, 64], strides = [1, 1]} : vector<1x192xf32> to vector<1x64xf32>
    %83 = vector.extract_strided_slice %78 {offsets = [0, 128], sizes = [1, 64], strides = [1, 1]} : vector<1x192xf32> to vector<1x64xf32>
    %84 = arith.mulf %82, %63 : vector<1x64xf32>
    %85 = arith.mulf %81, %80 : vector<1x64xf32>
    %86 = arith.addf %84, %85 : vector<1x64xf32>
    %87 = math.tanh %86 : vector<1x64xf32>
    %88 = arith.mulf %83, %87 : vector<1x64xf32>
    %89 = vector.extract_strided_slice %88 {offsets = [0, 0], sizes = [1, 32], strides = [1, 1]} : vector<1x64xf32> to vector<1x32xf32>
    %c1 = arith.constant 1 : index
    %c0_26 = arith.constant 0 : index
    %90 = vector.load %arg16[%c1, %c0_26] : memref<8x64xf32, #tpu.memory_space<vmem>>, vector<1x32xf32>
    tpu.vector_store %arg16[%c1, %c0_26], %89 {strides = array<i32>} : memref<8x64xf32, #tpu.memory_space<vmem>>, vector<1x32xf32>,
    %91 = vector.extract_strided_slice %88 {offsets = [0, 32], sizes = [1, 32], strides = [1, 1]} : vector<1x64xf32> to vector<1x32xf32>
    %c6 = arith.constant 6 : index
    %c32_27 = arith.constant 32 : index
    %92 = vector.load %arg16[%c6, %c32_27] : memref<8x64xf32, #tpu.memory_space<vmem>>, vector<1x32xf32>
    tpu.vector_store %arg16[%c6, %c32_27], %91 {strides = array<i32>} : memref<8x64xf32, #tpu.memory_space<vmem>>, vector<1x32xf32>,
    %93 = vector.extract_strided_slice %43 {offsets = [2, 0], sizes = [1, 256], strides = [1, 1]} : vector<8x256xf32> to vector<1x256xf32>
    %cst_28 = arith.constant dense<0.000000e+00> : vector<1x256xf32>
    %94 = tpu.matmul %88, %44, %cst_28 {dimension_numbers = #tpu.dot_dimension_numbers<[1], [0], [0], [1], [0, 0, 1, 1], [], []>} : vector<1x64xf32>, vector<64x256xf32>, vector<1x256xf32> -> vector<1x256xf32>
    %95 = arith.addf %93, %94 : vector<1x256xf32>
    %96 = vector.extract_strided_slice %95 {offsets = [0, 0], sizes = [1, 192], strides = [1, 1]} : vector<1x256xf32> to vector<1x192xf32>
    %97 = arith.negf %96 : vector<1x192xf32>
    %98 = math.exp %97 : vector<1x192xf32>
    %cst_29 = arith.constant 1.000000e+00 : f32
    %99 = vector.broadcast %cst_29 : f32 to vector<1x192xf32>
    %100 = arith.addf %99, %98 : vector<1x192xf32>
    %101 = arith.divf %99, %100 : vector<1x192xf32>
    %102 = vector.extract_strided_slice %95 {offsets = [0, 192], sizes = [1, 64], strides = [1, 1]} : vector<1x256xf32> to vector<1x64xf32>
    %103 = math.tanh %102 : vector<1x64xf32>
    %104 = vector.extract_strided_slice %101 {offsets = [0, 0], sizes = [1, 64], strides = [1, 1]} : vector<1x192xf32> to vector<1x64xf32>
    %105 = vector.extract_strided_slice %101 {offsets = [0, 64], sizes = [1, 64], strides = [1, 1]} : vector<1x192xf32> to vector<1x64xf32>
    %106 = vector.extract_strided_slice %101 {offsets = [0, 128], sizes = [1, 64], strides = [1, 1]} : vector<1x192xf32> to vector<1x64xf32>
    %107 = arith.mulf %105, %86 : vector<1x64xf32>
    %108 = arith.mulf %104, %103 : vector<1x64xf32>
    %109 = arith.addf %107, %108 : vector<1x64xf32>
    %110 = math.tanh %109 : vector<1x64xf32>
    %111 = arith.mulf %106, %110 : vector<1x64xf32>
    %112 = vector.extract_strided_slice %111 {offsets = [0, 0], sizes = [1, 32], strides = [1, 1]} : vector<1x64xf32> to vector<1x32xf32>
    %c2 = arith.constant 2 : index
    %c0_30 = arith.constant 0 : index
    %113 = vector.load %arg16[%c2, %c0_30] : memref<8x64xf32, #tpu.memory_space<vmem>>, vector<1x32xf32>
    tpu.vector_store %arg16[%c2, %c0_30], %112 {strides = array<i32>} : memref<8x64xf32, #tpu.memory_space<vmem>>, vector<1x32xf32>,
    %114 = vector.extract_strided_slice %111 {offsets = [0, 32], sizes = [1, 32], strides = [1, 1]} : vector<1x64xf32> to vector<1x32xf32>
    %c5 = arith.constant 5 : index
    %c32_31 = arith.constant 32 : index
    %115 = vector.load %arg16[%c5, %c32_31] : memref<8x64xf32, #tpu.memory_space<vmem>>, vector<1x32xf32>
    tpu.vector_store %arg16[%c5, %c32_31], %114 {strides = array<i32>} : memref<8x64xf32, #tpu.memory_space<vmem>>, vector<1x32xf32>,
    %116 = vector.extract_strided_slice %43 {offsets = [3, 0], sizes = [1, 256], strides = [1, 1]} : vector<8x256xf32> to vector<1x256xf32>
    %cst_32 = arith.constant dense<0.000000e+00> : vector<1x256xf32>
    %117 = tpu.matmul %111, %44, %cst_32 {dimension_numbers = #tpu.dot_dimension_numbers<[1], [0], [0], [1], [0, 0, 1, 1], [], []>} : vector<1x64xf32>, vector<64x256xf32>, vector<1x256xf32> -> vector<1x256xf32>
    %118 = arith.addf %116, %117 : vector<1x256xf32>
    %119 = vector.extract_strided_slice %118 {offsets = [0, 0], sizes = [1, 192], strides = [1, 1]} : vector<1x256xf32> to vector<1x192xf32>
    %120 = arith.negf %119 : vector<1x192xf32>
    %121 = math.exp %120 : vector<1x192xf32>
    %cst_33 = arith.constant 1.000000e+00 : f32
    %122 = vector.broadcast %cst_33 : f32 to vector<1x192xf32>
    %123 = arith.addf %122, %121 : vector<1x192xf32>
    %124 = arith.divf %122, %123 : vector<1x192xf32>
    %125 = vector.extract_strided_slice %118 {offsets = [0, 192], sizes = [1, 64], strides = [1, 1]} : vector<1x256xf32> to vector<1x64xf32>
    %126 = math.tanh %125 : vector<1x64xf32>
    %127 = vector.extract_strided_slice %124 {offsets = [0, 0], sizes = [1, 64], strides = [1, 1]} : vector<1x192xf32> to vector<1x64xf32>
    %128 = vector.extract_strided_slice %124 {offsets = [0, 64], sizes = [1, 64], strides = [1, 1]} : vector<1x192xf32> to vector<1x64xf32>
    %129 = vector.extract_strided_slice %124 {offsets = [0, 128], sizes = [1, 64], strides = [1, 1]} : vector<1x192xf32> to vector<1x64xf32>
    %130 = arith.mulf %128, %109 : vector<1x64xf32>
    %131 = arith.mulf %127, %126 : vector<1x64xf32>
    %132 = arith.addf %130, %131 : vector<1x64xf32>
    %133 = math.tanh %132 : vector<1x64xf32>
    %134 = arith.mulf %129, %133 : vector<1x64xf32>
    %135 = vector.extract_strided_slice %134 {offsets = [0, 0], sizes = [1, 32], strides = [1, 1]} : vector<1x64xf32> to vector<1x32xf32>
    %c3 = arith.constant 3 : index
    %c0_34 = arith.constant 0 : index
    %136 = vector.load %arg16[%c3, %c0_34] : memref<8x64xf32, #tpu.memory_space<vmem>>, vector<1x32xf32>
    tpu.vector_store %arg16[%c3, %c0_34], %135 {strides = array<i32>} : memref<8x64xf32, #tpu.memory_space<vmem>>, vector<1x32xf32>,
    %137 = vector.extract_strided_slice %134 {offsets = [0, 32], sizes = [1, 32], strides = [1, 1]} : vector<1x64xf32> to vector<1x32xf32>
    %c4 = arith.constant 4 : index
    %c32_35 = arith.constant 32 : index
    %138 = vector.load %arg16[%c4, %c32_35] : memref<8x64xf32, #tpu.memory_space<vmem>>, vector<1x32xf32>
    tpu.vector_store %arg16[%c4, %c32_35], %137 {strides = array<i32>} : memref<8x64xf32, #tpu.memory_space<vmem>>, vector<1x32xf32>,
    %139 = vector.extract_strided_slice %43 {offsets = [4, 0], sizes = [1, 256], strides = [1, 1]} : vector<8x256xf32> to vector<1x256xf32>
    %cst_36 = arith.constant dense<0.000000e+00> : vector<1x256xf32>
    %140 = tpu.matmul %134, %44, %cst_36 {dimension_numbers = #tpu.dot_dimension_numbers<[1], [0], [0], [1], [0, 0, 1, 1], [], []>} : vector<1x64xf32>, vector<64x256xf32>, vector<1x256xf32> -> vector<1x256xf32>
    %141 = arith.addf %139, %140 : vector<1x256xf32>
    %142 = vector.extract_strided_slice %141 {offsets = [0, 0], sizes = [1, 192], strides = [1, 1]} : vector<1x256xf32> to vector<1x192xf32>
    %143 = arith.negf %142 : vector<1x192xf32>
    %144 = math.exp %143 : vector<1x192xf32>
    %cst_37 = arith.constant 1.000000e+00 : f32
    %145 = vector.broadcast %cst_37 : f32 to vector<1x192xf32>
    %146 = arith.addf %145, %144 : vector<1x192xf32>
    %147 = arith.divf %145, %146 : vector<1x192xf32>
    %148 = vector.extract_strided_slice %141 {offsets = [0, 192], sizes = [1, 64], strides = [1, 1]} : vector<1x256xf32> to vector<1x64xf32>
    %149 = math.tanh %148 : vector<1x64xf32>
    %150 = vector.extract_strided_slice %147 {offsets = [0, 0], sizes = [1, 64], strides = [1, 1]} : vector<1x192xf32> to vector<1x64xf32>
    %151 = vector.extract_strided_slice %147 {offsets = [0, 64], sizes = [1, 64], strides = [1, 1]} : vector<1x192xf32> to vector<1x64xf32>
    %152 = vector.extract_strided_slice %147 {offsets = [0, 128], sizes = [1, 64], strides = [1, 1]} : vector<1x192xf32> to vector<1x64xf32>
    %153 = arith.mulf %151, %132 : vector<1x64xf32>
    %154 = arith.mulf %150, %149 : vector<1x64xf32>
    %155 = arith.addf %153, %154 : vector<1x64xf32>
    %156 = math.tanh %155 : vector<1x64xf32>
    %157 = arith.mulf %152, %156 : vector<1x64xf32>
    %158 = vector.extract_strided_slice %157 {offsets = [0, 0], sizes = [1, 32], strides = [1, 1]} : vector<1x64xf32> to vector<1x32xf32>
    %c4_38 = arith.constant 4 : index
    %c0_39 = arith.constant 0 : index
    %159 = vector.load %arg16[%c4_38, %c0_39] : memref<8x64xf32, #tpu.memory_space<vmem>>, vector<1x32xf32>
    tpu.vector_store %arg16[%c4_38, %c0_39], %158 {strides = array<i32>} : memref<8x64xf32, #tpu.memory_space<vmem>>, vector<1x32xf32>,
    %160 = vector.extract_strided_slice %157 {offsets = [0, 32], sizes = [1, 32], strides = [1, 1]} : vector<1x64xf32> to vector<1x32xf32>
    %c3_40 = arith.constant 3 : index
    %c32_41 = arith.constant 32 : index
    %161 = vector.load %arg16[%c3_40, %c32_41] : memref<8x64xf32, #tpu.memory_space<vmem>>, vector<1x32xf32>
    tpu.vector_store %arg16[%c3_40, %c32_41], %160 {strides = array<i32>} : memref<8x64xf32, #tpu.memory_space<vmem>>, vector<1x32xf32>,
    %162 = vector.extract_strided_slice %43 {offsets = [5, 0], sizes = [1, 256], strides = [1, 1]} : vector<8x256xf32> to vector<1x256xf32>
    %cst_42 = arith.constant dense<0.000000e+00> : vector<1x256xf32>
    %163 = tpu.matmul %157, %44, %cst_42 {dimension_numbers = #tpu.dot_dimension_numbers<[1], [0], [0], [1], [0, 0, 1, 1], [], []>} : vector<1x64xf32>, vector<64x256xf32>, vector<1x256xf32> -> vector<1x256xf32>
    %164 = arith.addf %162, %163 : vector<1x256xf32>
    %165 = vector.extract_strided_slice %164 {offsets = [0, 0], sizes = [1, 192], strides = [1, 1]} : vector<1x256xf32> to vector<1x192xf32>
    %166 = arith.negf %165 : vector<1x192xf32>
    %167 = math.exp %166 : vector<1x192xf32>
    %cst_43 = arith.constant 1.000000e+00 : f32
    %168 = vector.broadcast %cst_43 : f32 to vector<1x192xf32>
    %169 = arith.addf %168, %167 : vector<1x192xf32>
    %170 = arith.divf %168, %169 : vector<1x192xf32>
    %171 = vector.extract_strided_slice %164 {offsets = [0, 192], sizes = [1, 64], strides = [1, 1]} : vector<1x256xf32> to vector<1x64xf32>
    %172 = math.tanh %171 : vector<1x64xf32>
    %173 = vector.extract_strided_slice %170 {offsets = [0, 0], sizes = [1, 64], strides = [1, 1]} : vector<1x192xf32> to vector<1x64xf32>
    %174 = vector.extract_strided_slice %170 {offsets = [0, 64], sizes = [1, 64], strides = [1, 1]} : vector<1x192xf32> to vector<1x64xf32>
    %175 = vector.extract_strided_slice %170 {offsets = [0, 128], sizes = [1, 64], strides = [1, 1]} : vector<1x192xf32> to vector<1x64xf32>
    %176 = arith.mulf %174, %155 : vector<1x64xf32>
    %177 = arith.mulf %173, %172 : vector<1x64xf32>
    %178 = arith.addf %176, %177 : vector<1x64xf32>
    %179 = math.tanh %178 : vector<1x64xf32>
    %180 = arith.mulf %175, %179 : vector<1x64xf32>
    %181 = vector.extract_strided_slice %180 {offsets = [0, 0], sizes = [1, 32], strides = [1, 1]} : vector<1x64xf32> to vector<1x32xf32>
    %c5_44 = arith.constant 5 : index
    %c0_45 = arith.constant 0 : index
    %182 = vector.load %arg16[%c5_44, %c0_45] : memref<8x64xf32, #tpu.memory_space<vmem>>, vector<1x32xf32>
    tpu.vector_store %arg16[%c5_44, %c0_45], %181 {strides = array<i32>} : memref<8x64xf32, #tpu.memory_space<vmem>>, vector<1x32xf32>,
    %183 = vector.extract_strided_slice %180 {offsets = [0, 32], sizes = [1, 32], strides = [1, 1]} : vector<1x64xf32> to vector<1x32xf32>
    %c2_46 = arith.constant 2 : index
    %c32_47 = arith.constant 32 : index
    %184 = vector.load %arg16[%c2_46, %c32_47] : memref<8x64xf32, #tpu.memory_space<vmem>>, vector<1x32xf32>
    tpu.vector_store %arg16[%c2_46, %c32_47], %183 {strides = array<i32>} : memref<8x64xf32, #tpu.memory_space<vmem>>, vector<1x32xf32>,
    %185 = vector.extract_strided_slice %43 {offsets = [6, 0], sizes = [1, 256], strides = [1, 1]} : vector<8x256xf32> to vector<1x256xf32>
    %cst_48 = arith.constant dense<0.000000e+00> : vector<1x256xf32>
    %186 = tpu.matmul %180, %44, %cst_48 {dimension_numbers = #tpu.dot_dimension_numbers<[1], [0], [0], [1], [0, 0, 1, 1], [], []>} : vector<1x64xf32>, vector<64x256xf32>, vector<1x256xf32> -> vector<1x256xf32>
    %187 = arith.addf %185, %186 : vector<1x256xf32>
    %188 = vector.extract_strided_slice %187 {offsets = [0, 0], sizes = [1, 192], strides = [1, 1]} : vector<1x256xf32> to vector<1x192xf32>
    %189 = arith.negf %188 : vector<1x192xf32>
    %190 = math.exp %189 : vector<1x192xf32>
    %cst_49 = arith.constant 1.000000e+00 : f32
    %191 = vector.broadcast %cst_49 : f32 to vector<1x192xf32>
    %192 = arith.addf %191, %190 : vector<1x192xf32>
    %193 = arith.divf %191, %192 : vector<1x192xf32>
    %194 = vector.extract_strided_slice %187 {offsets = [0, 192], sizes = [1, 64], strides = [1, 1]} : vector<1x256xf32> to vector<1x64xf32>
    %195 = math.tanh %194 : vector<1x64xf32>
    %196 = vector.extract_strided_slice %193 {offsets = [0, 0], sizes = [1, 64], strides = [1, 1]} : vector<1x192xf32> to vector<1x64xf32>
    %197 = vector.extract_strided_slice %193 {offsets = [0, 64], sizes = [1, 64], strides = [1, 1]} : vector<1x192xf32> to vector<1x64xf32>
    %198 = vector.extract_strided_slice %193 {offsets = [0, 128], sizes = [1, 64], strides = [1, 1]} : vector<1x192xf32> to vector<1x64xf32>
    %199 = arith.mulf %197, %178 : vector<1x64xf32>
    %200 = arith.mulf %196, %195 : vector<1x64xf32>
    %201 = arith.addf %199, %200 : vector<1x64xf32>
    %202 = math.tanh %201 : vector<1x64xf32>
    %203 = arith.mulf %198, %202 : vector<1x64xf32>
    %204 = vector.extract_strided_slice %203 {offsets = [0, 0], sizes = [1, 32], strides = [1, 1]} : vector<1x64xf32> to vector<1x32xf32>
    %c6_50 = arith.constant 6 : index
    %c0_51 = arith.constant 0 : index
    %205 = vector.load %arg16[%c6_50, %c0_51] : memref<8x64xf32, #tpu.memory_space<vmem>>, vector<1x32xf32>
    tpu.vector_store %arg16[%c6_50, %c0_51], %204 {strides = array<i32>} : memref<8x64xf32, #tpu.memory_space<vmem>>, vector<1x32xf32>,
    %206 = vector.extract_strided_slice %203 {offsets = [0, 32], sizes = [1, 32], strides = [1, 1]} : vector<1x64xf32> to vector<1x32xf32>
    %c1_52 = arith.constant 1 : index
    %c32_53 = arith.constant 32 : index
    %207 = vector.load %arg16[%c1_52, %c32_53] : memref<8x64xf32, #tpu.memory_space<vmem>>, vector<1x32xf32>
    tpu.vector_store %arg16[%c1_52, %c32_53], %206 {strides = array<i32>} : memref<8x64xf32, #tpu.memory_space<vmem>>, vector<1x32xf32>,
    %208 = vector.extract_strided_slice %43 {offsets = [7, 0], sizes = [1, 256], strides = [1, 1]} : vector<8x256xf32> to vector<1x256xf32>
    %cst_54 = arith.constant dense<0.000000e+00> : vector<1x256xf32>
    %209 = tpu.matmul %203, %44, %cst_54 {dimension_numbers = #tpu.dot_dimension_numbers<[1], [0], [0], [1], [0, 0, 1, 1], [], []>} : vector<1x64xf32>, vector<64x256xf32>, vector<1x256xf32> -> vector<1x256xf32>
    %210 = arith.addf %208, %209 : vector<1x256xf32>
    %211 = vector.extract_strided_slice %210 {offsets = [0, 0], sizes = [1, 192], strides = [1, 1]} : vector<1x256xf32> to vector<1x192xf32>
    %212 = arith.negf %211 : vector<1x192xf32>
    %213 = math.exp %212 : vector<1x192xf32>
    %cst_55 = arith.constant 1.000000e+00 : f32
    %214 = vector.broadcast %cst_55 : f32 to vector<1x192xf32>
    %215 = arith.addf %214, %213 : vector<1x192xf32>
    %216 = arith.divf %214, %215 : vector<1x192xf32>
    %217 = vector.extract_strided_slice %210 {offsets = [0, 192], sizes = [1, 64], strides = [1, 1]} : vector<1x256xf32> to vector<1x64xf32>
    %218 = math.tanh %217 : vector<1x64xf32>
    %219 = vector.extract_strided_slice %216 {offsets = [0, 0], sizes = [1, 64], strides = [1, 1]} : vector<1x192xf32> to vector<1x64xf32>
    %220 = vector.extract_strided_slice %216 {offsets = [0, 64], sizes = [1, 64], strides = [1, 1]} : vector<1x192xf32> to vector<1x64xf32>
    %221 = vector.extract_strided_slice %216 {offsets = [0, 128], sizes = [1, 64], strides = [1, 1]} : vector<1x192xf32> to vector<1x64xf32>
    %222 = arith.mulf %220, %201 : vector<1x64xf32>
    %223 = arith.mulf %219, %218 : vector<1x64xf32>
    %224 = arith.addf %222, %223 : vector<1x64xf32>
    %225 = math.tanh %224 : vector<1x64xf32>
    %226 = arith.mulf %221, %225 : vector<1x64xf32>
    %227 = vector.extract_strided_slice %226 {offsets = [0, 0], sizes = [1, 32], strides = [1, 1]} : vector<1x64xf32> to vector<1x32xf32>
    %c7_56 = arith.constant 7 : index
    %c0_57 = arith.constant 0 : index
    %228 = vector.load %arg16[%c7_56, %c0_57] : memref<8x64xf32, #tpu.memory_space<vmem>>, vector<1x32xf32>
    tpu.vector_store %arg16[%c7_56, %c0_57], %227 {strides = array<i32>} : memref<8x64xf32, #tpu.memory_space<vmem>>, vector<1x32xf32>,
    %229 = vector.extract_strided_slice %226 {offsets = [0, 32], sizes = [1, 32], strides = [1, 1]} : vector<1x64xf32> to vector<1x32xf32>
    %c0_58 = arith.constant 0 : index
    %c32_59 = arith.constant 32 : index
    %230 = vector.load %arg16[%c0_58, %c32_59] : memref<8x64xf32, #tpu.memory_space<vmem>>, vector<1x32xf32>
    tpu.vector_store %arg16[%c0_58, %c32_59], %229 {strides = array<i32>} : memref<8x64xf32, #tpu.memory_space<vmem>>, vector<1x32xf32>,
    %c0_60 = arith.constant 0 : index
    %c0_61 = arith.constant 0 : index
    %231 = vector.load %arg14[%c0_60, %c0_61] : memref<2x64xf32, #tpu.memory_space<vmem>>, vector<1x64xf32>
    tpu.vector_store %arg14[%c0_60, %c0_61], %226 {strides = array<i32>} : memref<2x64xf32, #tpu.memory_space<vmem>>, vector<1x64xf32>,
    %c0_62 = arith.constant 0 : index
    %c0_63 = arith.constant 0 : index
    %232 = vector.load %arg15[%c0_62, %c0_63] : memref<2x64xf32, #tpu.memory_space<vmem>>, vector<1x64xf32>
    tpu.vector_store %arg15[%c0_62, %c0_63], %224 {strides = array<i32>} : memref<2x64xf32, #tpu.memory_space<vmem>>, vector<1x64xf32>,
    %c0_64 = arith.constant 0 : index
    %c0_65 = arith.constant 0 : index
    %233 = vector.load %arg16[%c0_64, %c0_65] : memref<8x64xf32, #tpu.memory_space<vmem>>, vector<8x64xf32>
    %c0_66 = arith.constant 0 : index
    %c0_67 = arith.constant 0 : index
    %234 = vector.load %arg8[%c0_66, %c0_67] : memref<64x256xf32, #tpu.memory_space<vmem>>, vector<64x256xf32>
    %cst_68 = arith.constant dense<0.000000e+00> : vector<8x256xf32>
    %235 = tpu.matmul %233, %234, %cst_68 {dimension_numbers = #tpu.dot_dimension_numbers<[1], [0], [0], [1], [0, 0, 1, 1], [], []>} : vector<8x64xf32>, vector<64x256xf32>, vector<8x256xf32> -> vector<8x256xf32>
    %c0_69 = arith.constant 0 : index
    %c0_70 = arith.constant 0 : index
    %236 = vector.load %arg10[%c0_69, %c0_70] : memref<1x256xf32, #tpu.memory_space<vmem>>, vector<1x256xf32>
    %237 = vector.broadcast %236 : vector<1x256xf32> to vector<8x256xf32>
    %238 = arith.addf %235, %237 : vector<8x256xf32>
    %cst_71 = arith.constant dense<0.000000e+00> : vector<8x256xf32>
    %239 = tpu.matmul %36, %238, %cst_71 {dimension_numbers = #tpu.dot_dimension_numbers<[1], [0], [0], [1], [0, 0, 1, 1], [], []>} : vector<8x8xf32>, vector<8x256xf32>, vector<8x256xf32> -> vector<8x256xf32>
    %240 = arith.select %28, %238, %239 : vector<8x256xi1>, vector<8x256xf32>
    %c0_72 = arith.constant 0 : index
    %c0_73 = arith.constant 0 : index
    %241 = vector.load %arg9[%c0_72, %c0_73] : memref<64x256xf32, #tpu.memory_space<vmem>>, vector<64x256xf32>
    %c1_74 = arith.constant 1 : index
    %c0_75 = arith.constant 0 : index
    %242 = vector.load %arg1[%c1_74, %c0_75] : memref<2x64xf32, #tpu.memory_space<vmem>>, vector<1x64xf32>
    %c1_76 = arith.constant 1 : index
    %c0_77 = arith.constant 0 : index
    %243 = vector.load %arg2[%c1_76, %c0_77] : memref<2x64xf32, #tpu.memory_space<vmem>>, vector<1x64xf32>
    %244 = vector.extract_strided_slice %240 {offsets = [0, 0], sizes = [1, 256], strides = [1, 1]} : vector<8x256xf32> to vector<1x256xf32>
    %cst_78 = arith.constant dense<0.000000e+00> : vector<1x256xf32>
    %245 = tpu.matmul %242, %241, %cst_78 {dimension_numbers = #tpu.dot_dimension_numbers<[1], [0], [0], [1], [0, 0, 1, 1], [], []>} : vector<1x64xf32>, vector<64x256xf32>, vector<1x256xf32> -> vector<1x256xf32>
    %246 = arith.addf %244, %245 : vector<1x256xf32>
    %247 = vector.extract_strided_slice %246 {offsets = [0, 0], sizes = [1, 192], strides = [1, 1]} : vector<1x256xf32> to vector<1x192xf32>
    %248 = arith.negf %247 : vector<1x192xf32>
    %249 = math.exp %248 : vector<1x192xf32>
    %cst_79 = arith.constant 1.000000e+00 : f32
    %250 = vector.broadcast %cst_79 : f32 to vector<1x192xf32>
    %251 = arith.addf %250, %249 : vector<1x192xf32>
    %252 = arith.divf %250, %251 : vector<1x192xf32>
    %253 = vector.extract_strided_slice %246 {offsets = [0, 192], sizes = [1, 64], strides = [1, 1]} : vector<1x256xf32> to vector<1x64xf32>
    %254 = math.tanh %253 : vector<1x64xf32>
    %255 = vector.extract_strided_slice %252 {offsets = [0, 0], sizes = [1, 64], strides = [1, 1]} : vector<1x192xf32> to vector<1x64xf32>
    %256 = vector.extract_strided_slice %252 {offsets = [0, 64], sizes = [1, 64], strides = [1, 1]} : vector<1x192xf32> to vector<1x64xf32>
    %257 = vector.extract_strided_slice %252 {offsets = [0, 128], sizes = [1, 64], strides = [1, 1]} : vector<1x192xf32> to vector<1x64xf32>
    %258 = arith.mulf %256, %243 : vector<1x64xf32>
    %259 = arith.mulf %255, %254 : vector<1x64xf32>
    %260 = arith.addf %258, %259 : vector<1x64xf32>
    %261 = math.tanh %260 : vector<1x64xf32>
    %262 = arith.mulf %257, %261 : vector<1x64xf32>
    %263 = vector.extract_strided_slice %262 {offsets = [0, 0], sizes = [1, 32], strides = [1, 1]} : vector<1x64xf32> to vector<1x32xf32>
    %c0_80 = arith.constant 0 : index
    %c0_81 = arith.constant 0 : index
    %264 = vector.load %arg17[%c0_80, %c0_81] : memref<8x64xf32, #tpu.memory_space<vmem>>, vector<1x32xf32>
    tpu.vector_store %arg17[%c0_80, %c0_81], %263 {strides = array<i32>} : memref<8x64xf32, #tpu.memory_space<vmem>>, vector<1x32xf32>,
    %265 = vector.extract_strided_slice %262 {offsets = [0, 32], sizes = [1, 32], strides = [1, 1]} : vector<1x64xf32> to vector<1x32xf32>
    %c7_82 = arith.constant 7 : index
    %c32_83 = arith.constant 32 : index
    %266 = vector.load %arg17[%c7_82, %c32_83] : memref<8x64xf32, #tpu.memory_space<vmem>>, vector<1x32xf32>
    tpu.vector_store %arg17[%c7_82, %c32_83], %265 {strides = array<i32>} : memref<8x64xf32, #tpu.memory_space<vmem>>, vector<1x32xf32>,
    %267 = vector.extract_strided_slice %240 {offsets = [1, 0], sizes = [1, 256], strides = [1, 1]} : vector<8x256xf32> to vector<1x256xf32>
    %cst_84 = arith.constant dense<0.000000e+00> : vector<1x256xf32>
    %268 = tpu.matmul %262, %241, %cst_84 {dimension_numbers = #tpu.dot_dimension_numbers<[1], [0], [0], [1], [0, 0, 1, 1], [], []>} : vector<1x64xf32>, vector<64x256xf32>, vector<1x256xf32> -> vector<1x256xf32>
    %269 = arith.addf %267, %268 : vector<1x256xf32>
    %270 = vector.extract_strided_slice %269 {offsets = [0, 0], sizes = [1, 192], strides = [1, 1]} : vector<1x256xf32> to vector<1x192xf32>
    %271 = arith.negf %270 : vector<1x192xf32>
    %272 = math.exp %271 : vector<1x192xf32>
    %cst_85 = arith.constant 1.000000e+00 : f32
    %273 = vector.broadcast %cst_85 : f32 to vector<1x192xf32>
    %274 = arith.addf %273, %272 : vector<1x192xf32>
    %275 = arith.divf %273, %274 : vector<1x192xf32>
    %276 = vector.extract_strided_slice %269 {offsets = [0, 192], sizes = [1, 64], strides = [1, 1]} : vector<1x256xf32> to vector<1x64xf32>
    %277 = math.tanh %276 : vector<1x64xf32>
    %278 = vector.extract_strided_slice %275 {offsets = [0, 0], sizes = [1, 64], strides = [1, 1]} : vector<1x192xf32> to vector<1x64xf32>
    %279 = vector.extract_strided_slice %275 {offsets = [0, 64], sizes = [1, 64], strides = [1, 1]} : vector<1x192xf32> to vector<1x64xf32>
    %280 = vector.extract_strided_slice %275 {offsets = [0, 128], sizes = [1, 64], strides = [1, 1]} : vector<1x192xf32> to vector<1x64xf32>
    %281 = arith.mulf %279, %260 : vector<1x64xf32>
    %282 = arith.mulf %278, %277 : vector<1x64xf32>
    %283 = arith.addf %281, %282 : vector<1x64xf32>
    %284 = math.tanh %283 : vector<1x64xf32>
    %285 = arith.mulf %280, %284 : vector<1x64xf32>
    %286 = vector.extract_strided_slice %285 {offsets = [0, 0], sizes = [1, 32], strides = [1, 1]} : vector<1x64xf32> to vector<1x32xf32>
    %c1_86 = arith.constant 1 : index
    %c0_87 = arith.constant 0 : index
    %287 = vector.load %arg17[%c1_86, %c0_87] : memref<8x64xf32, #tpu.memory_space<vmem>>, vector<1x32xf32>
    tpu.vector_store %arg17[%c1_86, %c0_87], %286 {strides = array<i32>} : memref<8x64xf32, #tpu.memory_space<vmem>>, vector<1x32xf32>,
    %288 = vector.extract_strided_slice %285 {offsets = [0, 32], sizes = [1, 32], strides = [1, 1]} : vector<1x64xf32> to vector<1x32xf32>
    %c6_88 = arith.constant 6 : index
    %c32_89 = arith.constant 32 : index
    %289 = vector.load %arg17[%c6_88, %c32_89] : memref<8x64xf32, #tpu.memory_space<vmem>>, vector<1x32xf32>
    tpu.vector_store %arg17[%c6_88, %c32_89], %288 {strides = array<i32>} : memref<8x64xf32, #tpu.memory_space<vmem>>, vector<1x32xf32>,
    %290 = vector.extract_strided_slice %240 {offsets = [2, 0], sizes = [1, 256], strides = [1, 1]} : vector<8x256xf32> to vector<1x256xf32>
    %cst_90 = arith.constant dense<0.000000e+00> : vector<1x256xf32>
    %291 = tpu.matmul %285, %241, %cst_90 {dimension_numbers = #tpu.dot_dimension_numbers<[1], [0], [0], [1], [0, 0, 1, 1], [], []>} : vector<1x64xf32>, vector<64x256xf32>, vector<1x256xf32> -> vector<1x256xf32>
    %292 = arith.addf %290, %291 : vector<1x256xf32>
    %293 = vector.extract_strided_slice %292 {offsets = [0, 0], sizes = [1, 192], strides = [1, 1]} : vector<1x256xf32> to vector<1x192xf32>
    %294 = arith.negf %293 : vector<1x192xf32>
    %295 = math.exp %294 : vector<1x192xf32>
    %cst_91 = arith.constant 1.000000e+00 : f32
    %296 = vector.broadcast %cst_91 : f32 to vector<1x192xf32>
    %297 = arith.addf %296, %295 : vector<1x192xf32>
    %298 = arith.divf %296, %297 : vector<1x192xf32>
    %299 = vector.extract_strided_slice %292 {offsets = [0, 192], sizes = [1, 64], strides = [1, 1]} : vector<1x256xf32> to vector<1x64xf32>
    %300 = math.tanh %299 : vector<1x64xf32>
    %301 = vector.extract_strided_slice %298 {offsets = [0, 0], sizes = [1, 64], strides = [1, 1]} : vector<1x192xf32> to vector<1x64xf32>
    %302 = vector.extract_strided_slice %298 {offsets = [0, 64], sizes = [1, 64], strides = [1, 1]} : vector<1x192xf32> to vector<1x64xf32>
    %303 = vector.extract_strided_slice %298 {offsets = [0, 128], sizes = [1, 64], strides = [1, 1]} : vector<1x192xf32> to vector<1x64xf32>
    %304 = arith.mulf %302, %283 : vector<1x64xf32>
    %305 = arith.mulf %301, %300 : vector<1x64xf32>
    %306 = arith.addf %304, %305 : vector<1x64xf32>
    %307 = math.tanh %306 : vector<1x64xf32>
    %308 = arith.mulf %303, %307 : vector<1x64xf32>
    %309 = vector.extract_strided_slice %308 {offsets = [0, 0], sizes = [1, 32], strides = [1, 1]} : vector<1x64xf32> to vector<1x32xf32>
    %c2_92 = arith.constant 2 : index
    %c0_93 = arith.constant 0 : index
    %310 = vector.load %arg17[%c2_92, %c0_93] : memref<8x64xf32, #tpu.memory_space<vmem>>, vector<1x32xf32>
    tpu.vector_store %arg17[%c2_92, %c0_93], %309 {strides = array<i32>} : memref<8x64xf32, #tpu.memory_space<vmem>>, vector<1x32xf32>,
    %311 = vector.extract_strided_slice %308 {offsets = [0, 32], sizes = [1, 32], strides = [1, 1]} : vector<1x64xf32> to vector<1x32xf32>
    %c5_94 = arith.constant 5 : index
    %c32_95 = arith.constant 32 : index
    %312 = vector.load %arg17[%c5_94, %c32_95] : memref<8x64xf32, #tpu.memory_space<vmem>>, vector<1x32xf32>
    tpu.vector_store %arg17[%c5_94, %c32_95], %311 {strides = array<i32>} : memref<8x64xf32, #tpu.memory_space<vmem>>, vector<1x32xf32>,
    %313 = vector.extract_strided_slice %240 {offsets = [3, 0], sizes = [1, 256], strides = [1, 1]} : vector<8x256xf32> to vector<1x256xf32>
    %cst_96 = arith.constant dense<0.000000e+00> : vector<1x256xf32>
    %314 = tpu.matmul %308, %241, %cst_96 {dimension_numbers = #tpu.dot_dimension_numbers<[1], [0], [0], [1], [0, 0, 1, 1], [], []>} : vector<1x64xf32>, vector<64x256xf32>, vector<1x256xf32> -> vector<1x256xf32>
    %315 = arith.addf %313, %314 : vector<1x256xf32>
    %316 = vector.extract_strided_slice %315 {offsets = [0, 0], sizes = [1, 192], strides = [1, 1]} : vector<1x256xf32> to vector<1x192xf32>
    %317 = arith.negf %316 : vector<1x192xf32>
    %318 = math.exp %317 : vector<1x192xf32>
    %cst_97 = arith.constant 1.000000e+00 : f32
    %319 = vector.broadcast %cst_97 : f32 to vector<1x192xf32>
    %320 = arith.addf %319, %318 : vector<1x192xf32>
    %321 = arith.divf %319, %320 : vector<1x192xf32>
    %322 = vector.extract_strided_slice %315 {offsets = [0, 192], sizes = [1, 64], strides = [1, 1]} : vector<1x256xf32> to vector<1x64xf32>
    %323 = math.tanh %322 : vector<1x64xf32>
    %324 = vector.extract_strided_slice %321 {offsets = [0, 0], sizes = [1, 64], strides = [1, 1]} : vector<1x192xf32> to vector<1x64xf32>
    %325 = vector.extract_strided_slice %321 {offsets = [0, 64], sizes = [1, 64], strides = [1, 1]} : vector<1x192xf32> to vector<1x64xf32>
    %326 = vector.extract_strided_slice %321 {offsets = [0, 128], sizes = [1, 64], strides = [1, 1]} : vector<1x192xf32> to vector<1x64xf32>
    %327 = arith.mulf %325, %306 : vector<1x64xf32>
    %328 = arith.mulf %324, %323 : vector<1x64xf32>
    %329 = arith.addf %327, %328 : vector<1x64xf32>
    %330 = math.tanh %329 : vector<1x64xf32>
    %331 = arith.mulf %326, %330 : vector<1x64xf32>
    %332 = vector.extract_strided_slice %331 {offsets = [0, 0], sizes = [1, 32], strides = [1, 1]} : vector<1x64xf32> to vector<1x32xf32>
    %c3_98 = arith.constant 3 : index
    %c0_99 = arith.constant 0 : index
    %333 = vector.load %arg17[%c3_98, %c0_99] : memref<8x64xf32, #tpu.memory_space<vmem>>, vector<1x32xf32>
    tpu.vector_store %arg17[%c3_98, %c0_99], %332 {strides = array<i32>} : memref<8x64xf32, #tpu.memory_space<vmem>>, vector<1x32xf32>,
    %334 = vector.extract_strided_slice %331 {offsets = [0, 32], sizes = [1, 32], strides = [1, 1]} : vector<1x64xf32> to vector<1x32xf32>
    %c4_100 = arith.constant 4 : index
    %c32_101 = arith.constant 32 : index
    %335 = vector.load %arg17[%c4_100, %c32_101] : memref<8x64xf32, #tpu.memory_space<vmem>>, vector<1x32xf32>
    tpu.vector_store %arg17[%c4_100, %c32_101], %334 {strides = array<i32>} : memref<8x64xf32, #tpu.memory_space<vmem>>, vector<1x32xf32>,
    %336 = vector.extract_strided_slice %240 {offsets = [4, 0], sizes = [1, 256], strides = [1, 1]} : vector<8x256xf32> to vector<1x256xf32>
    %cst_102 = arith.constant dense<0.000000e+00> : vector<1x256xf32>
    %337 = tpu.matmul %331, %241, %cst_102 {dimension_numbers = #tpu.dot_dimension_numbers<[1], [0], [0], [1], [0, 0, 1, 1], [], []>} : vector<1x64xf32>, vector<64x256xf32>, vector<1x256xf32> -> vector<1x256xf32>
    %338 = arith.addf %336, %337 : vector<1x256xf32>
    %339 = vector.extract_strided_slice %338 {offsets = [0, 0], sizes = [1, 192], strides = [1, 1]} : vector<1x256xf32> to vector<1x192xf32>
    %340 = arith.negf %339 : vector<1x192xf32>
    %341 = math.exp %340 : vector<1x192xf32>
    %cst_103 = arith.constant 1.000000e+00 : f32
    %342 = vector.broadcast %cst_103 : f32 to vector<1x192xf32>
    %343 = arith.addf %342, %341 : vector<1x192xf32>
    %344 = arith.divf %342, %343 : vector<1x192xf32>
    %345 = vector.extract_strided_slice %338 {offsets = [0, 192], sizes = [1, 64], strides = [1, 1]} : vector<1x256xf32> to vector<1x64xf32>
    %346 = math.tanh %345 : vector<1x64xf32>
    %347 = vector.extract_strided_slice %344 {offsets = [0, 0], sizes = [1, 64], strides = [1, 1]} : vector<1x192xf32> to vector<1x64xf32>
    %348 = vector.extract_strided_slice %344 {offsets = [0, 64], sizes = [1, 64], strides = [1, 1]} : vector<1x192xf32> to vector<1x64xf32>
    %349 = vector.extract_strided_slice %344 {offsets = [0, 128], sizes = [1, 64], strides = [1, 1]} : vector<1x192xf32> to vector<1x64xf32>
    %350 = arith.mulf %348, %329 : vector<1x64xf32>
    %351 = arith.mulf %347, %346 : vector<1x64xf32>
    %352 = arith.addf %350, %351 : vector<1x64xf32>
    %353 = math.tanh %352 : vector<1x64xf32>
    %354 = arith.mulf %349, %353 : vector<1x64xf32>
    %355 = vector.extract_strided_slice %354 {offsets = [0, 0], sizes = [1, 32], strides = [1, 1]} : vector<1x64xf32> to vector<1x32xf32>
    %c4_104 = arith.constant 4 : index
    %c0_105 = arith.constant 0 : index
    %356 = vector.load %arg17[%c4_104, %c0_105] : memref<8x64xf32, #tpu.memory_space<vmem>>, vector<1x32xf32>
    tpu.vector_store %arg17[%c4_104, %c0_105], %355 {strides = array<i32>} : memref<8x64xf32, #tpu.memory_space<vmem>>, vector<1x32xf32>,
    %357 = vector.extract_strided_slice %354 {offsets = [0, 32], sizes = [1, 32], strides = [1, 1]} : vector<1x64xf32> to vector<1x32xf32>
    %c3_106 = arith.constant 3 : index
    %c32_107 = arith.constant 32 : index
    %358 = vector.load %arg17[%c3_106, %c32_107] : memref<8x64xf32, #tpu.memory_space<vmem>>, vector<1x32xf32>
    tpu.vector_store %arg17[%c3_106, %c32_107], %357 {strides = array<i32>} : memref<8x64xf32, #tpu.memory_space<vmem>>, vector<1x32xf32>,
    %359 = vector.extract_strided_slice %240 {offsets = [5, 0], sizes = [1, 256], strides = [1, 1]} : vector<8x256xf32> to vector<1x256xf32>
    %cst_108 = arith.constant dense<0.000000e+00> : vector<1x256xf32>
    %360 = tpu.matmul %354, %241, %cst_108 {dimension_numbers = #tpu.dot_dimension_numbers<[1], [0], [0], [1], [0, 0, 1, 1], [], []>} : vector<1x64xf32>, vector<64x256xf32>, vector<1x256xf32> -> vector<1x256xf32>
    %361 = arith.addf %359, %360 : vector<1x256xf32>
    %362 = vector.extract_strided_slice %361 {offsets = [0, 0], sizes = [1, 192], strides = [1, 1]} : vector<1x256xf32> to vector<1x192xf32>
    %363 = arith.negf %362 : vector<1x192xf32>
    %364 = math.exp %363 : vector<1x192xf32>
    %cst_109 = arith.constant 1.000000e+00 : f32
    %365 = vector.broadcast %cst_109 : f32 to vector<1x192xf32>
    %366 = arith.addf %365, %364 : vector<1x192xf32>
    %367 = arith.divf %365, %366 : vector<1x192xf32>
    %368 = vector.extract_strided_slice %361 {offsets = [0, 192], sizes = [1, 64], strides = [1, 1]} : vector<1x256xf32> to vector<1x64xf32>
    %369 = math.tanh %368 : vector<1x64xf32>
    %370 = vector.extract_strided_slice %367 {offsets = [0, 0], sizes = [1, 64], strides = [1, 1]} : vector<1x192xf32> to vector<1x64xf32>
    %371 = vector.extract_strided_slice %367 {offsets = [0, 64], sizes = [1, 64], strides = [1, 1]} : vector<1x192xf32> to vector<1x64xf32>
    %372 = vector.extract_strided_slice %367 {offsets = [0, 128], sizes = [1, 64], strides = [1, 1]} : vector<1x192xf32> to vector<1x64xf32>
    %373 = arith.mulf %371, %352 : vector<1x64xf32>
    %374 = arith.mulf %370, %369 : vector<1x64xf32>
    %375 = arith.addf %373, %374 : vector<1x64xf32>
    %376 = math.tanh %375 : vector<1x64xf32>
    %377 = arith.mulf %372, %376 : vector<1x64xf32>
    %378 = vector.extract_strided_slice %377 {offsets = [0, 0], sizes = [1, 32], strides = [1, 1]} : vector<1x64xf32> to vector<1x32xf32>
    %c5_110 = arith.constant 5 : index
    %c0_111 = arith.constant 0 : index
    %379 = vector.load %arg17[%c5_110, %c0_111] : memref<8x64xf32, #tpu.memory_space<vmem>>, vector<1x32xf32>
    tpu.vector_store %arg17[%c5_110, %c0_111], %378 {strides = array<i32>} : memref<8x64xf32, #tpu.memory_space<vmem>>, vector<1x32xf32>,
    %380 = vector.extract_strided_slice %377 {offsets = [0, 32], sizes = [1, 32], strides = [1, 1]} : vector<1x64xf32> to vector<1x32xf32>
    %c2_112 = arith.constant 2 : index
    %c32_113 = arith.constant 32 : index
    %381 = vector.load %arg17[%c2_112, %c32_113] : memref<8x64xf32, #tpu.memory_space<vmem>>, vector<1x32xf32>
    tpu.vector_store %arg17[%c2_112, %c32_113], %380 {strides = array<i32>} : memref<8x64xf32, #tpu.memory_space<vmem>>, vector<1x32xf32>,
    %382 = vector.extract_strided_slice %240 {offsets = [6, 0], sizes = [1, 256], strides = [1, 1]} : vector<8x256xf32> to vector<1x256xf32>
    %cst_114 = arith.constant dense<0.000000e+00> : vector<1x256xf32>
    %383 = tpu.matmul %377, %241, %cst_114 {dimension_numbers = #tpu.dot_dimension_numbers<[1], [0], [0], [1], [0, 0, 1, 1], [], []>} : vector<1x64xf32>, vector<64x256xf32>, vector<1x256xf32> -> vector<1x256xf32>
    %384 = arith.addf %382, %383 : vector<1x256xf32>
    %385 = vector.extract_strided_slice %384 {offsets = [0, 0], sizes = [1, 192], strides = [1, 1]} : vector<1x256xf32> to vector<1x192xf32>
    %386 = arith.negf %385 : vector<1x192xf32>
    %387 = math.exp %386 : vector<1x192xf32>
    %cst_115 = arith.constant 1.000000e+00 : f32
    %388 = vector.broadcast %cst_115 : f32 to vector<1x192xf32>
    %389 = arith.addf %388, %387 : vector<1x192xf32>
    %390 = arith.divf %388, %389 : vector<1x192xf32>
    %391 = vector.extract_strided_slice %384 {offsets = [0, 192], sizes = [1, 64], strides = [1, 1]} : vector<1x256xf32> to vector<1x64xf32>
    %392 = math.tanh %391 : vector<1x64xf32>
    %393 = vector.extract_strided_slice %390 {offsets = [0, 0], sizes = [1, 64], strides = [1, 1]} : vector<1x192xf32> to vector<1x64xf32>
    %394 = vector.extract_strided_slice %390 {offsets = [0, 64], sizes = [1, 64], strides = [1, 1]} : vector<1x192xf32> to vector<1x64xf32>
    %395 = vector.extract_strided_slice %390 {offsets = [0, 128], sizes = [1, 64], strides = [1, 1]} : vector<1x192xf32> to vector<1x64xf32>
    %396 = arith.mulf %394, %375 : vector<1x64xf32>
    %397 = arith.mulf %393, %392 : vector<1x64xf32>
    %398 = arith.addf %396, %397 : vector<1x64xf32>
    %399 = math.tanh %398 : vector<1x64xf32>
    %400 = arith.mulf %395, %399 : vector<1x64xf32>
    %401 = vector.extract_strided_slice %400 {offsets = [0, 0], sizes = [1, 32], strides = [1, 1]} : vector<1x64xf32> to vector<1x32xf32>
    %c6_116 = arith.constant 6 : index
    %c0_117 = arith.constant 0 : index
    %402 = vector.load %arg17[%c6_116, %c0_117] : memref<8x64xf32, #tpu.memory_space<vmem>>, vector<1x32xf32>
    tpu.vector_store %arg17[%c6_116, %c0_117], %401 {strides = array<i32>} : memref<8x64xf32, #tpu.memory_space<vmem>>, vector<1x32xf32>,
    %403 = vector.extract_strided_slice %400 {offsets = [0, 32], sizes = [1, 32], strides = [1, 1]} : vector<1x64xf32> to vector<1x32xf32>
    %c1_118 = arith.constant 1 : index
    %c32_119 = arith.constant 32 : index
    %404 = vector.load %arg17[%c1_118, %c32_119] : memref<8x64xf32, #tpu.memory_space<vmem>>, vector<1x32xf32>
    tpu.vector_store %arg17[%c1_118, %c32_119], %403 {strides = array<i32>} : memref<8x64xf32, #tpu.memory_space<vmem>>, vector<1x32xf32>,
    %405 = vector.extract_strided_slice %240 {offsets = [7, 0], sizes = [1, 256], strides = [1, 1]} : vector<8x256xf32> to vector<1x256xf32>
    %cst_120 = arith.constant dense<0.000000e+00> : vector<1x256xf32>
    %406 = tpu.matmul %400, %241, %cst_120 {dimension_numbers = #tpu.dot_dimension_numbers<[1], [0], [0], [1], [0, 0, 1, 1], [], []>} : vector<1x64xf32>, vector<64x256xf32>, vector<1x256xf32> -> vector<1x256xf32>
    %407 = arith.addf %405, %406 : vector<1x256xf32>
    %408 = vector.extract_strided_slice %407 {offsets = [0, 0], sizes = [1, 192], strides = [1, 1]} : vector<1x256xf32> to vector<1x192xf32>
    %409 = arith.negf %408 : vector<1x192xf32>
    %410 = math.exp %409 : vector<1x192xf32>
    %cst_121 = arith.constant 1.000000e+00 : f32
    %411 = vector.broadcast %cst_121 : f32 to vector<1x192xf32>
    %412 = arith.addf %411, %410 : vector<1x192xf32>
    %413 = arith.divf %411, %412 : vector<1x192xf32>
    %414 = vector.extract_strided_slice %407 {offsets = [0, 192], sizes = [1, 64], strides = [1, 1]} : vector<1x256xf32> to vector<1x64xf32>
    %415 = math.tanh %414 : vector<1x64xf32>
    %416 = vector.extract_strided_slice %413 {offsets = [0, 0], sizes = [1, 64], strides = [1, 1]} : vector<1x192xf32> to vector<1x64xf32>
    %417 = vector.extract_strided_slice %413 {offsets = [0, 64], sizes = [1, 64], strides = [1, 1]} : vector<1x192xf32> to vector<1x64xf32>
    %418 = vector.extract_strided_slice %413 {offsets = [0, 128], sizes = [1, 64], strides = [1, 1]} : vector<1x192xf32> to vector<1x64xf32>
    %419 = arith.mulf %417, %398 : vector<1x64xf32>
    %420 = arith.mulf %416, %415 : vector<1x64xf32>
    %421 = arith.addf %419, %420 : vector<1x64xf32>
    %422 = math.tanh %421 : vector<1x64xf32>
    %423 = arith.mulf %418, %422 : vector<1x64xf32>
    %424 = vector.extract_strided_slice %423 {offsets = [0, 0], sizes = [1, 32], strides = [1, 1]} : vector<1x64xf32> to vector<1x32xf32>
    %c7_122 = arith.constant 7 : index
    %c0_123 = arith.constant 0 : index
    %425 = vector.load %arg17[%c7_122, %c0_123] : memref<8x64xf32, #tpu.memory_space<vmem>>, vector<1x32xf32>
    tpu.vector_store %arg17[%c7_122, %c0_123], %424 {strides = array<i32>} : memref<8x64xf32, #tpu.memory_space<vmem>>, vector<1x32xf32>,
    %426 = vector.extract_strided_slice %423 {offsets = [0, 32], sizes = [1, 32], strides = [1, 1]} : vector<1x64xf32> to vector<1x32xf32>
    %c0_124 = arith.constant 0 : index
    %c32_125 = arith.constant 32 : index
    %427 = vector.load %arg17[%c0_124, %c32_125] : memref<8x64xf32, #tpu.memory_space<vmem>>, vector<1x32xf32>
    tpu.vector_store %arg17[%c0_124, %c32_125], %426 {strides = array<i32>} : memref<8x64xf32, #tpu.memory_space<vmem>>, vector<1x32xf32>,
    %c1_126 = arith.constant 1 : index
    %c0_127 = arith.constant 0 : index
    %428 = vector.load %arg14[%c1_126, %c0_127] : memref<2x64xf32, #tpu.memory_space<vmem>>, vector<1x64xf32>
    tpu.vector_store %arg14[%c1_126, %c0_127], %423 {strides = array<i32>} : memref<2x64xf32, #tpu.memory_space<vmem>>, vector<1x64xf32>,
    %c1_128 = arith.constant 1 : index
    %c0_129 = arith.constant 0 : index
    %429 = vector.load %arg15[%c1_128, %c0_129] : memref<2x64xf32, #tpu.memory_space<vmem>>, vector<1x64xf32>
    tpu.vector_store %arg15[%c1_128, %c0_129], %421 {strides = array<i32>} : memref<2x64xf32, #tpu.memory_space<vmem>>, vector<1x64xf32>,
    %c0_130 = arith.constant 0 : index
    %c0_131 = arith.constant 0 : index
    %430 = vector.load %arg17[%c0_130, %c0_131] : memref<8x64xf32, #tpu.memory_space<vmem>>, vector<8x64xf32>
    %c0_132 = arith.constant 0 : index
    %c0_133 = arith.constant 0 : index
    %431 = vector.load %arg11[%c0_132, %c0_133] : memref<64x128xf32, #tpu.memory_space<vmem>>, vector<64x128xf32>
    %cst_134 = arith.constant dense<0.000000e+00> : vector<8x128xf32>
    %432 = tpu.matmul %430, %431, %cst_134 {dimension_numbers = #tpu.dot_dimension_numbers<[1], [0], [0], [1], [0, 0, 1, 1], [], []>} : vector<8x64xf32>, vector<64x128xf32>, vector<8x128xf32> -> vector<8x128xf32>
    %c0_135 = arith.constant 0 : index
    %c0_136 = arith.constant 0 : index
    %433 = vector.load %arg12[%c0_135, %c0_136] : memref<1x128xf32, #tpu.memory_space<vmem>>, vector<1x128xf32>
    %434 = vector.broadcast %433 : vector<1x128xf32> to vector<8x128xf32>
    %435 = arith.addf %432, %434 : vector<8x128xf32>
    %c0_137 = arith.constant 0 : index
    %c0_138 = arith.constant 0 : index
    %436 = vector.load %arg13[%c0_137, %c0_138] : memref<8x128xf32, #tpu.memory_space<vmem>>, vector<8x128xf32>
    tpu.vector_store %arg13[%c0_137, %c0_138], %435 {strides = array<i32>} : memref<8x128xf32, #tpu.memory_space<vmem>>, vector<8x128xf32>,
    return
  }
}

</mosaic_0001>

<bundles_post_ra>
// kernel: rnntp_forward.1
= control target key start
LH: loop header
LB: loop body
LE: loop exit
PB: predicated region body
PF: predicated region fallthrough
CT: control target
= control target key end

     0   :  { %21 = vsyncpa [#allocation5], 0  ;;  %s3985_s0 = inlined_call_operand.vmem [shape: f32[8,16], index: 0, kind: input, shape index: {}]   ;;  %s3986_s1 = inlined_call_operand.vmem [shape: f32[2,64], index: 1, kind: input, shape index: {}, may-alias: {1,2}]   ;;  %s3987_s2 = inlined_call_operand.vmem [shape: f32[2,64], index: 2, kind: input, shape index: {}, may-alias: {1,2}]   ;;  %s3988_s3 = inlined_call_operand.vmem [shape: f32[16,32], index: 3, kind: input, shape index: {}]   ;;  %s3989_s4 = inlined_call_operand.vmem [shape: f32[1,32], index: 4, kind: input, shape index: {}]   ;;  %s3990_s5 = inlined_call_operand.hbm [shape: f32[32,256], index: 5, kind: input, shape index: {}]   ;;  %s3991_s6 = inlined_call_operand.hbm [shape: f32[64,256], index: 6, kind: input, shape index: {}]   ;;  %s3992_s7 = inlined_call_operand.vmem [shape: f32[1,256], index: 7, kind: input, shape index: {}]   ;;  %s3993_s8 = inlined_call_operand.hbm [shape: f32[64,256], index: 8, kind: input, shape index: {}]   ;;  %s3994_s9 = inlined_call_operand.hbm [shape: f32[64,256], index: 9, kind: input, shape index: {}]   ;;  %s3995_s10 = inlined_call_operand.vmem [shape: f32[1,256], index: 10, kind: input, shape index: {}]   ;;  %s3996_s11 = inlined_call_operand.hbm [shape: f32[64,128], index: 11, kind: input, shape index: {}]   ;;  %s3997_s12 = inlined_call_operand.vmem [shape: f32[1,128], index: 12, kind: input, shape index: {}]   ;;  %s3998_s13 = inlined_call_operand.hbm [shape: f32[8,128], index: 13, kind: output, shape index: {0}]   ;;  %s3999_s14 = inlined_call_operand.vmem [shape: f32[2,64], index: 14, kind: output, shape index: {1}]   ;;  %s4000_s15 = inlined_call_operand.vmem [shape: f32[2,64], index: 15, kind: output, shape index: {2}]  }
   0x1   :  { %22 = vsyncpa [#allocation8], 0 }
   0x2   :  { %23 = vsyncpa [#allocation11], 0 }
   0x3   :  { %24 = vsyncpa [#allocation6], 0  ;;  %s3373_s18 = smov [#allocation7]   ;;  %s3374_s20 = smov [#allocation10]  }
   0x4   :  { %s52_s19 = sshll.u32 %s3373_s18, 4  ;;  %s78_s21 = sshll.u32 %s3374_s20, 4  ;;  %s53_s19 = int_to_ptr.vmem [resolvable:$true] %s52_s19  ;;  %s3467_s21 = int_to_ptr.vmem [resolvable:$true] %s78_s21 }
   0x5   :  { %s3233_s24 = scalar_lea.hbm %s3991_s6, 2048 }
   0x6   :  { %p3234_p0 = scmp.ne.s32.totalorder %s3991_s6, %s3233_s24  ;;  %p3237_p1 = scmp.lt.u32.totalorder %s3233_s24, %s3991_s6 }
   0x8   :  { %p3239_p2 = pnand %p3237_p1, %p3234_p0 }
   0xa   :  { %3242 = shalt.err (!%p3239_p2)
}
   0xb   :  { %s3243_s29 = scalar_lea.vmem %s53_s19, 2048  ;;  %p3248_p4 = scmp.lt.s32.totalorder %s53_s19, %s53_s19 }
   0xc   :  { %p3244_p3 = scmp.ne.s32.totalorder %s53_s19, %s3243_s29  ;;  %p3249_p5 = scmp.lt.s32.totalorder %s3243_s29, %s3243_s29 }
   0xe   :  { %p3250_p6 = por %p3249_p5, %p3248_p4 }
  0x10   :  { %p3251_p7 = pnand %p3250_p6, %p3244_p3 }
  0x12   :  { %3254 = shalt.err (!%p3251_p7)
}
  0x13   :  { %s3375_s30 = smov 256   ;;  %s3376_s16 = smov 16  }
  0x14   :  { %58 = dma.hbm_to_vmem [thread:$0]  %s3991_s6, 2048, %s53_s19, [#allocation8], %s3375_s30, %s3375_s30, %s3376_s16  }
  0x15   :  { %s3255_s23 = scalar_lea.hbm %s3994_s9, 2048 }
  0x16   :  { %p3256_p8 = scmp.ne.s32.totalorder %s3994_s9, %s3255_s23  ;;  %p3259_p9 = scmp.lt.u32.totalorder %s3255_s23, %s3994_s9 }
  0x18   :  { %p3261_p10 = pnand %p3259_p9, %p3256_p8 }
  0x1a   :  { %3264 = shalt.err (!%p3261_p10)
}
  0x1b   :  { %s3265_s28 = scalar_lea.vmem %s3467_s21, 2048  ;;  %p3270_p12 = scmp.lt.s32.totalorder %s3467_s21, %s3467_s21 }
  0x1c   :  { %p3266_p11 = scmp.ne.s32.totalorder %s3467_s21, %s3265_s28  ;;  %p3271_p13 = scmp.lt.s32.totalorder %s3265_s28, %s3265_s28 }
  0x1e   :  { %p3272_p0 = por %p3271_p13, %p3270_p12 }
  0x20   :  { %p3273_p1 = pnand %p3272_p0, %p3266_p11 }
  0x22   :  { %3276 = shalt.err (!%p3273_p1)
}
  0x23   :  { %84 = dma.hbm_to_vmem [thread:$0]  %s3994_s9, 2048, %s3467_s21, [#allocation11], %s3375_s30, %s3375_s30, %s3376_s16  }
  0x24   :  { %s3377_s29 = smov [#allocation4]   ;;  %s3378_s18 = smov [#allocation9]  }
  0x25   :  { %s40_s17 = sshll.u32 %s3377_s29, 4  ;;  %s66_s20 = sshll.u32 %s3378_s18, 4  ;;  %s41_s17 = int_to_ptr.vmem [resolvable:$true] %s40_s17  ;;  %s3504_s20 = int_to_ptr.vmem [resolvable:$true] %s66_s20 }
  0x26   :  { %s3277_s24 = scalar_lea.hbm %s3990_s5, 1024 }
  0x27   :  { %p3278_p2 = scmp.ne.s32.totalorder %s3990_s5, %s3277_s24  ;;  %p3281_p3 = scmp.lt.u32.totalorder %s3277_s24, %s3990_s5 }
  0x29   :  { %p3283_p4 = pnand %p3281_p3, %p3278_p2 }
  0x2b   :  { %3286 = shalt.err (!%p3283_p4)
}
  0x2c   :  { %s3287_s9 = scalar_lea.vmem %s41_s17, 1024  ;;  %p3292_p6 = scmp.lt.s32.totalorder %s41_s17, %s41_s17 }
  0x2d   :  { %p3288_p5 = scmp.ne.s32.totalorder %s41_s17, %s3287_s9  ;;  %p3293_p7 = scmp.lt.s32.totalorder %s3287_s9, %s3287_s9 }
  0x2f   :  { %p3294_p8 = por %p3293_p7, %p3292_p6 }
  0x31   :  { %p3295_p9 = pnand %p3294_p8, %p3288_p5 }
  0x33   :  { %3298 = shalt.err (!%p3295_p9)
}
  0x34   :  { %46 = dma.hbm_to_vmem [thread:$0]  %s3990_s5, 1024, %s41_s17, [#allocation5], %s3375_s30, %s3375_s30, %s3376_s16  }
  0x35   :  { %s3299_s18 = scalar_lea.hbm %s3993_s8, 2048 }
  0x36   :  { %p3300_p10 = scmp.ne.s32.totalorder %s3993_s8, %s3299_s18  ;;  %p3303_p11 = scmp.lt.u32.totalorder %s3299_s18, %s3993_s8 }
  0x38   :  { %p3305_p12 = pnand %p3303_p11, %p3300_p10 }
  0x3a   :  { %3308 = shalt.err (!%p3305_p12)
}
  0x3b   :  { %s3309_s26 = scalar_lea.vmem %s3504_s20, 2048  ;;  %p3314_p0 = scmp.lt.s32.totalorder %s3504_s20, %s3504_s20 }
  0x3c   :  { %p3310_p13 = scmp.ne.s32.totalorder %s3504_s20, %s3309_s26  ;;  %p3315_p1 = scmp.lt.s32.totalorder %s3309_s26, %s3309_s26 }
  0x3e   :  { %p3316_p2 = por %p3315_p1, %p3314_p0 }
  0x40   :  { %p3317_p3 = pnand %p3316_p2, %p3310_p13 }
  0x42   :  { %3320 = shalt.err (!%p3317_p3)
}
  0x43   :  { %72 = dma.hbm_to_vmem [thread:$0]  %s3993_s8, 2048, %s3504_s20, [#allocation8], %s3375_s30, %s3375_s30, %s3376_s16  }
  0x44   :  { %s3379_s27 = smov [#allocation12]   ;;  %s3321_s6 = scalar_lea.hbm %s3996_s11, 1024 }
  0x45   :  { %s92_s28 = sshll.u32 %s3379_s27, 4  ;;  %p3322_p4 = scmp.ne.s32.totalorder %s3996_s11, %s3321_s6  ;;  %s93_s28 = int_to_ptr.vmem [resolvable:$true] %s92_s28 }
  0x46   :  { %p3325_p5 = scmp.lt.u32.totalorder %s3321_s6, %s3996_s11 }
  0x48   :  { %p3327_p6 = pnand %p3325_p5, %p3322_p4 }
  0x4a   :  { %3330 = shalt.err (!%p3327_p6)
}
  0x4b   :  { %s3331_s23 = scalar_lea.vmem %s93_s28, 1024  ;;  %p3336_p8 = scmp.lt.s32.totalorder %s93_s28, %s93_s28 }
  0x4c   :  { %p3332_p7 = scmp.ne.s32.totalorder %s93_s28, %s3331_s23  ;;  %p3337_p9 = scmp.lt.s32.totalorder %s3331_s23, %s3331_s23 }
  0x4e   :  { %p3338_p10 = por %p3337_p9, %p3336_p8 }
  0x50   :  { %p3339_p11 = pnand %p3338_p10, %p3332_p7 }
  0x52   :  { %3342 = shalt.err (!%p3339_p11)
}
  0x53   :  { %s3380_s8 = smov 128   ;;  %s3381_s30 = smov 8  }
  0x54   :  { %98 = dma.hbm_to_vmem [thread:$0]  %s3996_s11, 1024, %s93_s28, [#allocation11], %s3380_s8, %s3380_s8, %s3381_s30  }
  0x55   :  { %3365 = dma.done.wait [#allocation5], 1024  }
  0x56   :  { %3366 = vsyncadd [#allocation5], 4294966272 }
  0x57   :  { %3367 = dma.done.wait [#allocation8], 4096  }
  0x58   :  { %3368 = vsyncadd [#allocation8], 4294963200 }
  0x59   :  { %3369 = dma.done.wait [#allocation11], 3072  }
  0x5a   :  { %3370 = vsyncadd [#allocation11], 4294964224  ;;  %v3382_v0 = vmov 0.0|0.0   ;;  %vm4001_vm0 = vmmov 0   ;;  %v3384_v1 = vmov 0.0   ;;  %v117_v2 = vld [vmem:[%s3988_s3] sm:$0xff]  ;;  %v201_v47 = vlaneseq }
  0x5b   :  { %2732 = vmatprep.subr.bf16.mxu0 %v3382_v0  ;;  %2710 = vmatprep.mubr.msk.f32.mxu0 %vm4001_vm0, %v3384_v1  ;;  %v118_v3 = vld [vmem:[%s3988_s3 + $0x8] sm:$0xff]  ;;  %v236_v5 = vld [vmem:[#allocation4 + $0x8] sm:$0xff]  ;;  %v235_v7 = vld [vmem:[#allocation4] sm:$0xff]  ;;  %vm126_vm1 = vcmask 130048   ;;  %vm255_vm2 = vcmask 261120   ;;  %vm330_vm4 = vcmask 64512  }
  0x5c   :  { %323 = vmatprep.mubr.f32.mxu1 %v3384_v1  ;;  %v2733_v4 = vpack.c.bf16 %v118_v3, %v117_v2  ;;  %v238_v6 = vld [vmem:[#allocation4 + $0x18] sm:$0xff]  ;;  %v237_v9 = vld [vmem:[#allocation4 + $0x10] sm:$0xff]  ;;  %v240_v12 = vld [vmem:[#allocation4 + $0x28] sm:$0xff]  ;;  %v3596_v48 = vshrl.u32 %v201_v47, 7  ;;  %v202_v49 = vand.u32 127, %v201_v47  ;;  %vm425_vm5 = vcmask 523264  }
  0x5d   :  { %v2735_v8 = vpack.c.bf16 %v238_v6, %v236_v5  ;;  %v116_v10 = vld [vmem:[%s3985_s0] sm:$0xff]  ;;  %v2737_v11 = vpack.c.bf16 %v237_v9, %v235_v7  ;;  %v242_v13 = vld [vmem:[#allocation4 + $0x38] sm:$0xff]  ;;  %v239_v15 = vld [vmem:[#allocation4 + $0x20] sm:$0xff]  ;;  %s3385_s9 = smov 64   ;;  %vm4002_vm0 = vcmask 521477   ;;  %s3386_s5 = smov [#allocation13]  }
  0x5e   :  { %2734 = vmatpush3.bf16.msra.mxu0 %v2733_v4  ;;  %v2739_v14 = vpack.c.bf16 %v242_v13, %v240_v12  ;;  %v241_v16 = vld [vmem:[#allocation4 + $0x30] sm:$0xff]  ;;  %v408_v23 = vld [vmem:[#allocation7 + $0x8] sm:$0xff]  ;;  %v410_v24 = vld [vmem:[#allocation7 + $0x18] sm:$0xff]  ;;  %v251_v50 = vsub.s32 1, %v3596_v48  ;;  %v247_v52 = vsub.s32 0, %v3596_v48  ;;  %v232_v53 = vadd.s32 %v3596_v48, %v202_v49  ;;  %s2619_s17 = sshll.u32 %s3386_s5, 4  ;;  %s2620_s17 = int_to_ptr.vmem [resolvable:$true] %s2619_s17 }
  0x5f   :  { %2736 = vmatprep.subr.bf16.mxu1 %v2735_v8  ;;  %v2741_v17 = vpack.c.bf16 %v241_v16, %v239_v15  ;;  %v2638_v18 = vld [vmem:[%s3989_s4] ss:$0 sm:$0xff]  ;;  %v3571_v25 = vpack.c.bf16 %v410_v24, %v408_v23  ;;  %v407_v26 = vld [vmem:[#allocation7] sm:$0xff]  ;;  %v412_v29 = vld [vmem:[#allocation7 + $0x28] sm:$0xff]  ;;  %v203_v2 = vadd.s32 128, %v202_v49  ;;  %vm206_vm11 = vcmp.ge.s32.totalorder %v202_v49, 64  ;;  %p3348_p13 = scmp.lt.s32.totalorder %s2620_s17, %s2620_s17 }
  0x60   :  { %2738 = vmatpush1.bf16.msra.mxu1 %v2737_v11  ;;  %v409_v27 = vld [vmem:[#allocation7 + $0x10] sm:$0xff]  ;;  %v414_v30 = vld [vmem:[#allocation7 + $0x38] sm:$0xff]  ;;  %v411_v32 = vld [vmem:[#allocation7 + $0x20] sm:$0xff]  ;;  %vm233_vm3 = vcmp.eq.s32.totalorder %v232_v53, 7  ;;  %vm208_vm12 = vcmp.lt.s32.totalorder %v202_v49, 96  ;;  %vm204_vm13 = vcmp.lt.s32.totalorder %v202_v49, 32 }
  0x61   :  { %2711 = vmatmul.mubr.msk.f32.vlgmr.msra.gmra.mrb[0].mxu0 %vm126_vm1, %v116_v10  ;;  %2740 = vmatprep.subr.bf16.mxu1 %v2739_v14  ;;  %v3573_v28 = vpack.c.bf16 %v409_v27, %v407_v26  ;;  %v3577_v31 = vpack.c.bf16 %v414_v30, %v412_v29  ;;  %v413_v33 = vld [vmem:[#allocation7 + $0x30] sm:$0xff]  ;;  %v416_v35 = vld [vmem:[#allocation7 + $0x48] sm:$0xff]  ;;  %v418_v36 = vld [vmem:[#allocation7 + $0x58] sm:$0xff]  ;;  %v3609_v60 = vsel %vm233_vm3, 1.0, %v3384_v1  ;;  %vm223_vm6 = vcmp.ge.s32.totalorder %v203_v2, 192 }
  0x62   :  { %398 = vmatprep.mubr.f32.mxu0 %v3384_v1  ;;  %v3579_v34 = vpack.c.bf16 %v413_v33, %v411_v32  ;;  %v3583_v37 = vpack.c.bf16 %v418_v36, %v416_v35  ;;  %v415_v38 = vld [vmem:[#allocation7 + $0x40] sm:$0xff]  ;;  %v417_v39 = vld [vmem:[#allocation7 + $0x50] sm:$0xff]  ;;  %v420_v41 = vld [vmem:[#allocation7 + $0x68] sm:$0xff]  ;;  %vm225_vm7 = vcmp.lt.s32.totalorder %v203_v2, 224  ;;  %vm217_vm8 = vcmp.lt.s32.totalorder %v203_v2, 160 }
  0x63   :  { %v3585_v40 = vpack.c.bf16 %v417_v39, %v415_v38  ;;  %v422_v42 = vld [vmem:[#allocation7 + $0x78] sm:$0xff]  ;;  %v419_v44 = vld [vmem:[#allocation7 + $0x60] sm:$0xff]  ;;  %v421_v45 = vld [vmem:[#allocation7 + $0x70] sm:$0xff]  ;;  %vm536_vm1 = vcmask 253952   ;;  %vm655_vm3 = vcmask 254977  }
  0x64   :  { %2742 = vmatpush1.bf16.msra.mxu1 %v2741_v17  ;;  %v3589_v43 = vpack.c.bf16 %v422_v42, %v420_v41  ;;  %v3591_v46 = vpack.c.bf16 %v421_v45, %v419_v44  ;;  %v243_v51 = vld [vmem:[%s3992_s7] sm:$0x3]  ;;  %vm227_vm9 = vmand %vm223_vm6, %vm225_vm7  ;;  %vm657_vm6 = vcmask 517377   ;;  %vm775_vm7 = vcmask 256002  }
  0x65   :  { %2760 = vmatprep.subr.bf16.mxu1 %v3571_v25  ;;  %v252_v54 = vrot.slane %v243_v51, %v251_v50  ;;  %v248_v55 = vrot.slane %v243_v51, %v247_v52  ;;  %v423_v61 = vld [vmem:[%s3986_s1] sm:$0x1]  ;;  %vm3636_vm10 = vmor %vm217_vm8, %vm227_vm9  ;;  %vm777_vm8 = vcmask 518402   ;;  %vm895_vm9 = vcmask 257027   ;;  %v1578_v48 = vld [vmem:[%s3986_s1 + $0x1] sm:$0x1] }
  0x66   :  { %v424_v9 = vld [vmem:[%s3987_s2] sm:$0x1]  ;;  %vm210_vm14 = vmand %vm206_vm11, %vm208_vm12  ;;  %vm897_vm11 = vcmask 519427   ;;  %vm1015_vm12 = vcmask 258052  }
  0x67   :  { %vm3650_vm15 = vmor %vm204_vm13, %vm210_vm14  ;;  %vm4006_vm13 = vcmask 520452   ;;  %vm4003_vm14 = vcmask 259077  }
 0x134   :  { %v196_v19 = vpop.f32.mrb[0].mxu0 }
 0x135   :  { %v197_v20 = vadd.f32 %v2638_v18, %v196_v19  ;;  %v2712_v21 = vpop.f32.mrb[1].mxu0 }
 0x137   :  { %v200_v22 = vmax.f32 %v197_v20, 0.0 }
 0x139   :  { %2640 = vmatmul.mubr.msk.f32.vlgmr.msra.gmra.mrb[0].mxu1 %vm255_vm2, %v200_v22  ;;  %vm538_vm2 = vcmask 516352  }
 0x13a   :  { %607 = vmatprep.mubr.f32.mxu1 %v3384_v1  ;;  %2762 = vmatpush1.bf16.msra.mxu1 %v3573_v28 }
 0x13b   :  { %2764 = vmatprep.subr.bf16.mxu1 %v3577_v31 }
 0x13e   :  { %2766 = vmatpush1.bf16.msra.mxu1 %v3579_v34 }
 0x13f   :  { %2768 = vmatprep.subr.bf16.mxu1 %v3583_v37 }
 0x142   :  { %2770 = vmatpush1.bf16.msra.mxu1 %v3585_v40 }
 0x143   :  { %2772 = vmatprep.subr.bf16.mxu1 %v3589_v43 }
 0x146   :  { %2774 = vmatpush1.bf16.msra.mxu1 %v3591_v46 }
 0x147   :  { %2792 = vmatprep.subr.bf16.mxu1 %v3571_v25 }
 0x20c   :  { %v325_v56 = vpop.f32.mrb[0].mxu1 }
 0x20d   :  { %v327_v57 = vpop.f32.mrb[1].mxu1  ;;  %v326_v59 = vadd.f32 %v325_v56, %v248_v55 }
 0x20e   :  { %v328_v58 = vadd.f32 %v327_v57, %v252_v54 }
 0x210   :  { %334 = vmatprep.subr.mxu0 %v328_v58 }
 0x211   :  { %335 = vmatpush1.msra.mxu0 %v326_v59 }
 0x212   :  { %2641 = vmatmul.mubr.msk.f32.vlgmr.msra.gmra.mrb[2].mxu0 %vm330_vm4, %v3609_v60  ;;  %2744 = vmatprep.subr.bf16.mxu0 %v3571_v25 }
 0x213   :  { %2746 = vmatpush1.bf16.msra.mxu0 %v3573_v28  ;;  %493 = vmatprep.mubr.f32.mxu0 %v3384_v1 }
 0x214   :  { %2748 = vmatprep.subr.bf16.mxu0 %v3577_v31 }
 0x217   :  { %2750 = vmatpush1.bf16.msra.mxu0 %v3579_v34 }
 0x218   :  { %2752 = vmatprep.subr.bf16.mxu0 %v3583_v37 }
 0x21b   :  { %2754 = vmatpush1.bf16.msra.mxu0 %v3585_v40 }
 0x21c   :  { %2756 = vmatprep.subr.bf16.mxu0 %v3589_v43 }
 0x21f   :  { %2758 = vmatpush1.bf16.msra.mxu0 %v3591_v46 }
 0x220   :  { %2776 = vmatprep.subr.bf16.mxu0 %v3571_v25 }
 0x222   :  { %2642 = vmatmul.mubr.msk.f32.vlgmr.msra.gmra.mrb[4].mxu0 %vm425_vm5, %v423_v61 }
 0x223   :  { %2778 = vmatpush1.bf16.msra.mxu0 %v3573_v28  ;;  %727 = vmatprep.mubr.f32.mxu0 %v3384_v1 }
 0x224   :  { %2780 = vmatprep.subr.bf16.mxu0 %v3577_v31 }
 0x227   :  { %2782 = vmatpush1.bf16.msra.mxu0 %v3579_v34 }
 0x228   :  { %2784 = vmatprep.subr.bf16.mxu0 %v3583_v37 }
 0x22b   :  { %2786 = vmatpush1.bf16.msra.mxu0 %v3585_v40 }
 0x22c   :  { %2788 = vmatprep.subr.bf16.mxu0 %v3589_v43 }
 0x22f   :  { %2790 = vmatpush1.bf16.msra.mxu0 %v3591_v46 }
 0x230   :  { %2808 = vmatprep.subr.bf16.mxu0 %v3571_v25 }
 0x2e5   :  { %v400_v62 = vpop.f32.mrb[2].mxu0 }
 0x2e6   :  { %v402_v63 = vpop.f32.mrb[3].mxu0  ;;  %v3656_v11 = vsel %vm3650_vm15, %v326_v59, %v400_v62 }
 0x2e7   :  { %v3642_v5 = vsel %vm3636_vm10, %v328_v58, %v402_v63 }
 0x2f5   :  { %v495_v4 = vpop.f32.mrb[4].mxu0 }
 0x2f6   :  { %v497_v6 = vpop.f32.mrb[5].mxu0  ;;  %v500_v12 = vadd.f32 %v495_v4, %v3656_v11 }
 0x2f7   :  { %v501_v7 = vadd.f32 %v497_v6, %v3642_v5 }
 0x2f8   :  { %v2643_v13 = vmul.f32 -1.442695, %v500_v12 }
 0x2f9   :  { %3041 = vtanh.f32 %v501_v7  ;;  %v2644_v24 = vmul.f32 -1.442695, %v501_v7 }
 0x2fa   :  { %3043 = vpow2.f32 %v2643_v13 }
 0x303   :  { %v3042_v8 = vpop.eup %3041 }
 0x304   :  { %521 = vrot.lane.b32.xlu0 %v3042_v8, %s3385_s9  ;;  %v3044_v14 = vpop.eup %3043 }
 0x305   :  { %v508_v15 = vadd.f32 1.0, %v3044_v14 }
 0x307   :  { %3045 = vrcp.f32 %v508_v15 }
 0x308   :  { %516 = vrot.lane.b32.xlu0 %v424_v9, %s3385_s9 }
 0x311   :  { %v3046_v16 = vpop.eup %3045 }
 0x376   :  { %v522_v17 = vpop.permute.xlu0 %521 }
 0x377   :  { %v524_v18 = vmul.f32 %v3046_v16, %v522_v17 }
 0x379   :  { %526 = vrot.lane.b32.xlu1 %v524_v18, %s3385_s9 }
 0x37a   :  { %v517_v19 = vpop.permute.xlu0 %516 }
 0x37b   :  { %v519_v20 = vmul.f32 %v3046_v16, %v517_v19 }
 0x3eb   :  { %v527_v21 = vpop.permute.xlu1 %526 }
 0x3ec   :  { %v529_v22 = vadd.f32 %v527_v21, %v519_v20 }
 0x3ee   :  { %3047 = vtanh.f32 %v529_v22  ;;  %v636_v54 = vrot.slane %v529_v22, 7 }
 0x3ef   :  { %3049 = vpow2.f32 %v2644_v24 }
 0x3f8   :  { %v3048_v23 = vpop.eup %3047 }
 0x3f9   :  { %532 = vrot.lane.b32.xlu1 %v3048_v23, %s3385_s9  ;;  %v3050_v26 = vpop.eup %3049 }
 0x3fa   :  { %v509_v27 = vadd.f32 1.0, %v3050_v26 }
 0x3fc   :  { %3051 = vrcp.f32 %v509_v27 }
 0x406   :  { %v3052_v29 = vpop.eup %3051 }
 0x46b   :  { %v533_v30 = vpop.permute.xlu1 %532 }
 0x46c   :  { %v535_v32 = vmul.f32 %v3052_v29, %v533_v30 }
 0x46e   :  { %537 = vst.msk [vmem:[#allocation2] sm:$0x1] %vm536_vm1, %v535_v32  ;;  %2645 = vmatmul.mubr.msk.f32.vlgmr.msra.gmra.mrb[2].mxu1 %vm425_vm5, %v535_v32 }
 0x46f   :  { %539 = vst.msk [vmem:[#allocation2 + $0x7] sm:$0x1] %vm538_vm2, %v535_v32  ;;  %2794 = vmatpush1.bf16.msra.mxu1 %v3573_v28  ;;  %847 = vmatprep.mubr.f32.mxu1 %v3384_v1 }
 0x470   :  { %2796 = vmatprep.subr.bf16.mxu1 %v3577_v31 }
 0x473   :  { %2798 = vmatpush1.bf16.msra.mxu1 %v3579_v34 }
 0x474   :  { %2800 = vmatprep.subr.bf16.mxu1 %v3583_v37 }
 0x477   :  { %2802 = vmatpush1.bf16.msra.mxu1 %v3585_v40 }
 0x478   :  { %2804 = vmatprep.subr.bf16.mxu1 %v3589_v43 }
 0x47b   :  { %2806 = vmatpush1.bf16.msra.mxu1 %v3591_v46 }
 0x47c   :  { %2824 = vmatprep.subr.bf16.mxu1 %v3571_v25 }
 0x541   :  { %v609_v33 = vpop.f32.mrb[2].mxu1 }
 0x542   :  { %v611_v35 = vpop.f32.mrb[3].mxu1  ;;  %v616_v41 = vrot.slane %v609_v33, 7 }
 0x543   :  { %v617_v36 = vrot.slane %v611_v35, 7 }
 0x544   :  { %v620_v42 = vadd.f32 %v616_v41, %v3656_v11 }
 0x545   :  { %v621_v38 = vadd.f32 %v617_v36, %v3642_v5 }
 0x546   :  { %v2646_v44 = vmul.f32 -1.442695, %v620_v42 }
 0x547   :  { %3053 = vtanh.f32 %v621_v38  ;;  %v2647_v59 = vmul.f32 -1.442695, %v621_v38 }
 0x548   :  { %3055 = vpow2.f32 %v2646_v44 }
 0x551   :  { %v3054_v39 = vpop.eup %3053 }
 0x552   :  { %640 = vrot.lane.b32.xlu0 %v3054_v39, %s3385_s9  ;;  %v3056_v45 = vpop.eup %3055 }
 0x553   :  { %v628_v47 = vadd.f32 1.0, %v3056_v45 }
 0x555   :  { %3057 = vrcp.f32 %v628_v47 }
 0x55f   :  { %v3058_v49 = vpop.eup %3057 }
 0x560   :  { %v638_v55 = vmul.f32 %v3058_v49, %v636_v54 }
 0x5c4   :  { %v641_v51 = vpop.permute.xlu0 %640 }
 0x5c5   :  { %v643_v53 = vmul.f32 %v3058_v49, %v641_v51 }
 0x5c7   :  { %645 = vrot.lane.b32.xlu1 %v643_v53, %s3385_s9 }
 0x639   :  { %v646_v56 = vpop.permute.xlu1 %645 }
 0x63a   :  { %v648_v57 = vadd.f32 %v646_v56, %v638_v55 }
 0x63c   :  { %3059 = vtanh.f32 %v648_v57  ;;  %v756_v22 = vrot.slane %v648_v57, 7 }
 0x63d   :  { %3061 = vpow2.f32 %v2647_v59 }
 0x646   :  { %v3060_v58 = vpop.eup %3059 }
 0x647   :  { %651 = vrot.lane.b32.xlu0 %v3060_v58, %s3385_s9  ;;  %v3062_v61 = vpop.eup %3061 }
 0x648   :  { %v629_v62 = vadd.f32 1.0, %v3062_v61 }
 0x64a   :  { %3063 = vrcp.f32 %v629_v62 }
 0x654   :  { %v3064_v63 = vpop.eup %3063 }
 0x6b9   :  { %v652_v2 = vpop.permute.xlu0 %651 }
 0x6ba   :  { %v654_v4 = vmul.f32 %v3064_v63, %v652_v2 }
 0x6bc   :  { %656 = vst.msk [vmem:[#allocation2] sm:$0x2] %vm655_vm3, %v654_v4  ;;  %v660_v6 = vrot.slane %v654_v4, 1 }
 0x6bd   :  { %658 = vst.msk [vmem:[#allocation2 + $0x5] sm:$0x2] %vm657_vm6, %v654_v4 }
 0x6be   :  { %2648 = vmatmul.mubr.msk.f32.vlgmr.msra.gmra.mrb[6].mxu0 %vm425_vm5, %v660_v6 }
 0x6bf   :  { %2810 = vmatpush1.bf16.msra.mxu0 %v3573_v28  ;;  %967 = vmatprep.mubr.f32.mxu0 %v3384_v1 }
 0x6c0   :  { %2812 = vmatprep.subr.bf16.mxu0 %v3577_v31 }
 0x6c3   :  { %2814 = vmatpush1.bf16.msra.mxu0 %v3579_v34 }
 0x6c4   :  { %2816 = vmatprep.subr.bf16.mxu0 %v3583_v37 }
 0x6c7   :  { %2818 = vmatpush1.bf16.msra.mxu0 %v3585_v40 }
 0x6c8   :  { %2820 = vmatprep.subr.bf16.mxu0 %v3589_v43 }
 0x6cb   :  { %2822 = vmatpush1.bf16.msra.mxu0 %v3591_v46 }
 0x6cc   :  { %2840 = vmatprep.subr.bf16.mxu0 %v3571_v25 }
 0x791   :  { %v729_v7 = vpop.f32.mrb[6].mxu0 }
 0x792   :  { %v731_v8 = vpop.f32.mrb[7].mxu0  ;;  %v736_v14 = vrot.slane %v729_v7, 6 }
 0x793   :  { %v737_v9 = vrot.slane %v731_v8, 6 }
 0x794   :  { %v740_v15 = vadd.f32 %v736_v14, %v3656_v11 }
 0x795   :  { %v741_v12 = vadd.f32 %v737_v9, %v3642_v5 }
 0x796   :  { %v2649_v16 = vmul.f32 -1.442695, %v740_v15 }
 0x797   :  { %3065 = vtanh.f32 %v741_v12  ;;  %v2650_v29 = vmul.f32 -1.442695, %v741_v12 }
 0x798   :  { %3067 = vpow2.f32 %v2649_v16 }
 0x7a1   :  { %v3066_v13 = vpop.eup %3065 }
 0x7a2   :  { %760 = vrot.lane.b32.xlu1 %v3066_v13, %s3385_s9  ;;  %v3068_v17 = vpop.eup %3067 }
 0x7a3   :  { %v748_v18 = vadd.f32 1.0, %v3068_v17 }
 0x7a5   :  { %3069 = vrcp.f32 %v748_v18 }
 0x7af   :  { %v3070_v19 = vpop.eup %3069 }
 0x7b0   :  { %v758_v23 = vmul.f32 %v3070_v19, %v756_v22 }
 0x814   :  { %v761_v20 = vpop.permute.xlu1 %760 }
 0x815   :  { %v763_v21 = vmul.f32 %v3070_v19, %v761_v20 }
 0x817   :  { %765 = vrot.lane.b32.xlu0 %v763_v21, %s3385_s9 }
 0x889   :  { %v766_v24 = vpop.permute.xlu0 %765 }
 0x88a   :  { %v768_v26 = vadd.f32 %v766_v24, %v758_v23 }
 0x88c   :  { %3071 = vtanh.f32 %v768_v26  ;;  %v876_v57 = vrot.slane %v768_v26, 7 }
 0x88d   :  { %3073 = vpow2.f32 %v2650_v29 }
 0x896   :  { %v3072_v27 = vpop.eup %3071 }
 0x897   :  { %771 = vrot.lane.b32.xlu1 %v3072_v27, %s3385_s9  ;;  %v3074_v30 = vpop.eup %3073 }
 0x898   :  { %v749_v32 = vadd.f32 1.0, %v3074_v30 }
 0x89a   :  { %3075 = vrcp.f32 %v749_v32 }
 0x8a4   :  { %v3076_v33 = vpop.eup %3075 }
 0x909   :  { %v772_v35 = vpop.permute.xlu1 %771 }
 0x90a   :  { %v774_v36 = vmul.f32 %v3076_v33, %v772_v35 }
 0x90c   :  { %776 = vst.msk [vmem:[#allocation2] sm:$0x4] %vm775_vm7, %v774_v36  ;;  %v780_v38 = vrot.slane %v774_v36, 2 }
 0x90d   :  { %778 = vst.msk [vmem:[#allocation2 + $0x3] sm:$0x4] %vm777_vm8, %v774_v36 }
 0x90e   :  { %2651 = vmatmul.mubr.msk.f32.vlgmr.msra.gmra.mrb[4].mxu1 %vm425_vm5, %v780_v38 }
 0x90f   :  { %2826 = vmatpush1.bf16.msra.mxu1 %v3573_v28  ;;  %1087 = vmatprep.mubr.f32.mxu1 %v3384_v1 }
 0x910   :  { %2828 = vmatprep.subr.bf16.mxu1 %v3577_v31 }
 0x913   :  { %2830 = vmatpush1.bf16.msra.mxu1 %v3579_v34 }
 0x914   :  { %2832 = vmatprep.subr.bf16.mxu1 %v3583_v37 }
 0x917   :  { %2834 = vmatpush1.bf16.msra.mxu1 %v3585_v40 }
 0x918   :  { %2836 = vmatprep.subr.bf16.mxu1 %v3589_v43 }
 0x91b   :  { %2838 = vmatpush1.bf16.msra.mxu1 %v3591_v46 }
 0x91c   :  { %2856 = vmatprep.subr.bf16.mxu1 %v3571_v25 }
 0x9e1   :  { %v849_v39 = vpop.f32.mrb[4].mxu1 }
 0x9e2   :  { %v851_v41 = vpop.f32.mrb[5].mxu1  ;;  %v856_v47 = vrot.slane %v849_v39, 5 }
 0x9e3   :  { %v857_v42 = vrot.slane %v851_v41, 5 }
 0x9e4   :  { %v860_v49 = vadd.f32 %v856_v47, %v3656_v11 }
 0x9e5   :  { %v861_v44 = vadd.f32 %v857_v42, %v3642_v5 }
 0x9e6   :  { %v2652_v51 = vmul.f32 -1.442695, %v860_v49 }
 0x9e7   :  { %3077 = vtanh.f32 %v861_v44  ;;  %v2653_v63 = vmul.f32 -1.442695, %v861_v44 }
 0x9e8   :  { %3079 = vpow2.f32 %v2652_v51 }
 0x9f1   :  { %v3078_v45 = vpop.eup %3077 }
 0x9f2   :  { %880 = vrot.lane.b32.xlu0 %v3078_v45, %s3385_s9  ;;  %v3080_v53 = vpop.eup %3079 }
 0x9f3   :  { %v868_v54 = vadd.f32 1.0, %v3080_v53 }
 0x9f5   :  { %3081 = vrcp.f32 %v868_v54 }
 0x9ff   :  { %v3082_v55 = vpop.eup %3081 }
 0xa00   :  { %v878_v58 = vmul.f32 %v3082_v55, %v876_v57 }
 0xa64   :  { %v881_v56 = vpop.permute.xlu0 %880 }
 0xa65   :  { %v883_v25 = vmul.f32 %v3082_v55, %v881_v56 }
 0xa67   :  { %885 = vrot.lane.b32.xlu1 %v883_v25, %s3385_s9 }
 0xad9   :  { %v886_v59 = vpop.permute.xlu1 %885 }
 0xada   :  { %v888_v61 = vadd.f32 %v886_v59, %v878_v58 }
 0xadc   :  { %3083 = vtanh.f32 %v888_v61  ;;  %v996_v26 = vrot.slane %v888_v61, 7 }
 0xadd   :  { %3085 = vpow2.f32 %v2653_v63 }
 0xae6   :  { %v3084_v62 = vpop.eup %3083 }
 0xae7   :  { %891 = vrot.lane.b32.xlu0 %v3084_v62, %s3385_s9  ;;  %v3086_v2 = vpop.eup %3085 }
 0xae8   :  { %v869_v4 = vadd.f32 1.0, %v3086_v2 }
 0xaea   :  { %3087 = vrcp.f32 %v869_v4 }
 0xaf4   :  { %v3088_v6 = vpop.eup %3087 }
 0xb59   :  { %v892_v7 = vpop.permute.xlu0 %891 }
 0xb5a   :  { %v894_v8 = vmul.f32 %v3088_v6, %v892_v7 }
 0xb5c   :  { %896 = vst.msk [vmem:[#allocation2] sm:$0x8] %vm895_vm9, %v894_v8  ;;  %v900_v9 = vrot.slane %v894_v8, 3 }
 0xb5d   :  { %898 = vst.msk [vmem:[#allocation2 + $0x1] sm:$0x8] %vm897_vm11, %v894_v8 }
 0xb5e   :  { %2654 = vmatmul.mubr.msk.f32.vlgmr.msra.gmra.mrb[8].mxu0 %vm425_vm5, %v900_v9 }
 0xb5f   :  { %2842 = vmatpush1.bf16.msra.mxu0 %v3573_v28  ;;  %1207 = vmatprep.mubr.f32.mxu0 %v3384_v1 }
 0xb60   :  { %2844 = vmatprep.subr.bf16.mxu0 %v3577_v31 }
 0xb63   :  { %2846 = vmatpush1.bf16.msra.mxu0 %v3579_v34 }
 0xb64   :  { %2848 = vmatprep.subr.bf16.mxu0 %v3583_v37 }
 0xb67   :  { %2850 = vmatpush1.bf16.msra.mxu0 %v3585_v40 }
 0xb68   :  { %2852 = vmatprep.subr.bf16.mxu0 %v3589_v43 }
 0xb6b   :  { %2854 = vmatpush1.bf16.msra.mxu0 %v3591_v46 }
 0xc31   :  { %v969_v12 = vpop.f32.mrb[8].mxu0 }
 0xc32   :  { %v971_v13 = vpop.f32.mrb[9].mxu0  ;;  %v976_v17 = vrot.slane %v969_v12, 4 }
 0xc33   :  { %v977_v14 = vrot.slane %v971_v13, 4 }
 0xc34   :  { %v980_v18 = vadd.f32 %v976_v17, %v3656_v11 }
 0xc35   :  { %v981_v15 = vadd.f32 %v977_v14, %v3642_v5 }
 0xc36   :  { %v2655_v19 = vmul.f32 -1.442695, %v980_v18 }
 0xc37   :  { %3089 = vtanh.f32 %v981_v15  ;;  %v2656_v33 = vmul.f32 -1.442695, %v981_v15 }
 0xc38   :  { %3091 = vpow2.f32 %v2655_v19 }
 0xc41   :  { %v3090_v16 = vpop.eup %3089 }
 0xc42   :  { %1000 = vrot.lane.b32.xlu1 %v3090_v16, %s3385_s9  ;;  %v3092_v20 = vpop.eup %3091 }
 0xc43   :  { %v988_v21 = vadd.f32 1.0, %v3092_v20 }
 0xc45   :  { %3093 = vrcp.f32 %v988_v21 }
 0xc4f   :  { %v3094_v22 = vpop.eup %3093 }
 0xc50   :  { %v998_v27 = vmul.f32 %v3094_v22, %v996_v26 }
 0xcb4   :  { %v1001_v23 = vpop.permute.xlu1 %1000 }
 0xcb5   :  { %v1003_v24 = vmul.f32 %v3094_v22, %v1001_v23 }
 0xcb7   :  { %1005 = vrot.lane.b32.xlu0 %v1003_v24, %s3385_s9 }
 0xd29   :  { %v1006_v29 = vpop.permute.xlu0 %1005 }
 0xd2a   :  { %v1008_v30 = vadd.f32 %v1006_v29, %v998_v27 }
 0xd2c   :  { %3095 = vtanh.f32 %v1008_v30  ;;  %v1116_v54 = vrot.slane %v1008_v30, 7 }
 0xd2d   :  { %3097 = vpow2.f32 %v2656_v33 }
 0xd36   :  { %v3096_v32 = vpop.eup %3095 }
 0xd37   :  { %1011 = vrot.lane.b32.xlu1 %v3096_v32, %s3385_s9  ;;  %v3098_v35 = vpop.eup %3097 }
 0xd38   :  { %v989_v36 = vadd.f32 1.0, %v3098_v35 }
 0xd3a   :  { %3099 = vrcp.f32 %v989_v36 }
 0xd44   :  { %v3100_v38 = vpop.eup %3099 }
 0xda9   :  { %v1012_v39 = vpop.permute.xlu1 %1011 }
 0xdaa   :  { %v1014_v41 = vmul.f32 %v3100_v38, %v1012_v39 }
 0xdac   :  { %1016 = vst.msk [vmem:[#allocation2] sm:$0x10] %vm1015_vm12, %v1014_v41  ;;  %v1020_v42 = vrot.slane %v1014_v41, 4 }
 0xdad   :  { %1018 = vst.msk [vmem:[#allocation2 - $0x1] sm:$0x10] %vm4006_vm13, %v1014_v41  ;;  %vm1379_vm13 = vcmask 523271  }
 0xdae   :  { %2657 = vmatmul.mubr.msk.f32.vlgmr.msra.gmra.mrb[6].mxu1 %vm425_vm5, %v1020_v42 }
 0xdaf   :  { %2858 = vmatpush1.bf16.msra.mxu1 %v3573_v28  ;;  %1327 = vmatprep.mubr.f32.mxu1 %v3384_v1 }
 0xdb0   :  { %2860 = vmatprep.subr.bf16.mxu1 %v3577_v31 }
 0xdb3   :  { %2862 = vmatpush1.bf16.msra.mxu1 %v3579_v34 }
 0xdb4   :  { %2864 = vmatprep.subr.bf16.mxu1 %v3583_v37 }
 0xdb7   :  { %2866 = vmatpush1.bf16.msra.mxu1 %v3585_v40 }
 0xdb8   :  { %2868 = vmatprep.subr.bf16.mxu1 %v3589_v43 }
 0xdbb   :  { %2870 = vmatpush1.bf16.msra.mxu1 %v3591_v46 }
 0xe81   :  { %v1089_v44 = vpop.f32.mrb[6].mxu1 }
 0xe82   :  { %v1091_v45 = vpop.f32.mrb[7].mxu1  ;;  %v1096_v31 = vrot.slane %v1089_v44, 3 }
 0xe83   :  { %v1097_v47 = vrot.slane %v1091_v45, 3 }
 0xe84   :  { %v1100_v34 = vadd.f32 %v1096_v31, %v3656_v11 }
 0xe85   :  { %v1101_v49 = vadd.f32 %v1097_v47, %v3642_v5 }
 0xe86   :  { %v2658_v51 = vmul.f32 -1.442695, %v1100_v34 }
 0xe87   :  { %3101 = vtanh.f32 %v1101_v49  ;;  %v2659_v58 = vmul.f32 -1.442695, %v1101_v49 }
 0xe88   :  { %3103 = vpow2.f32 %v2658_v51 }
 0xe91   :  { %v3102_v28 = vpop.eup %3101 }
 0xe92   :  { %1120 = vrot.lane.b32.xlu0 %v3102_v28, %s3385_s9  ;;  %v3104_v37 = vpop.eup %3103 }
 0xe93   :  { %v1108_v40 = vadd.f32 1.0, %v3104_v37 }
 0xe95   :  { %3105 = vrcp.f32 %v1108_v40  ;;  %v1388_v40 = vld [vmem:[#allocation9 + $0x8] sm:$0xff] }
 0xe9f   :  { %v3106_v43 = vpop.eup %3105 }
 0xea0   :  { %v1118_v55 = vmul.f32 %v3106_v43, %v1116_v54  ;;  %v1392_v54 = vld [vmem:[#allocation9 + $0x28] sm:$0xff] }
 0xf04   :  { %v1121_v53 = vpop.permute.xlu0 %1120 }
 0xf05   :  { %v1123_v46 = vmul.f32 %v3106_v43, %v1121_v53  ;;  %v1390_v43 = vld [vmem:[#allocation9 + $0x18] sm:$0xff] }
 0xf06   :  { %v2871_v53 = vpack.c.bf16 %v1390_v43, %v1388_v40  ;;  %v1574_v43 = vld [vmem:[#allocation10 + $0x60] sm:$0xff] }
 0xf07   :  { %1125 = vrot.lane.b32.xlu1 %v1123_v46, %s3385_s9  ;;  %v1389_v46 = vld [vmem:[#allocation9 + $0x10] sm:$0xff] }
 0xf08   :  { %2872 = vmatprep.subr.bf16.mxu0 %v2871_v53 }
 0xf79   :  { %v1126_v56 = vpop.permute.xlu1 %1125 }
 0xf7a   :  { %v1128_v25 = vadd.f32 %v1126_v56, %v1118_v55  ;;  %v1394_v55 = vld [vmem:[#allocation9 + $0x38] sm:$0xff] }
 0xf7c   :  { %3107 = vtanh.f32 %v1128_v25  ;;  %v1236_v21 = vrot.slane %v1128_v25, 7  ;;  %v2875_v25 = vpack.c.bf16 %v1394_v55, %v1392_v54  ;;  %v1403_v54 = vld [vmem:[%s3995_s10] sm:$0x3] }
 0xf7d   :  { %3109 = vpow2.f32 %v2659_v58  ;;  %v1412_v55 = vrot.slane %v1403_v54, %v251_v50 }
 0xf86   :  { %v3108_v57 = vpop.eup %3107 }
 0xf87   :  { %1131 = vrot.lane.b32.xlu0 %v3108_v57, %s3385_s9  ;;  %v3110_v59 = vpop.eup %3109  ;;  %v1393_v57 = vld [vmem:[#allocation9 + $0x30] sm:$0xff] }
 0xf88   :  { %v1109_v61 = vadd.f32 1.0, %v3110_v59 }
 0xf8a   :  { %3111 = vrcp.f32 %v1109_v61 }
 0xf94   :  { %v3112_v62 = vpop.eup %3111 }
 0xff9   :  { %v1132_v63 = vpop.permute.xlu0 %1131 }
 0xffa   :  { %v1134_v2 = vmul.f32 %v3112_v62, %v1132_v63  ;;  %v1396_v63 = vld [vmem:[#allocation9 + $0x48] sm:$0xff] }
 0xffc   :  { %1136 = vst.msk [vmem:[#allocation2] sm:$0x20] %vm4003_vm14, %v1134_v2  ;;  %v1140_v4 = vrot.slane %v1134_v2, 5  ;;  %vm4004_vm14 = vcmask 522502  }
 0xffd   :  { %1138 = vst.msk [vmem:[#allocation2 - $0x3] sm:$0x20] %vm4002_vm0, %v1134_v2  ;;  %vm4005_vm0 = vcmask 260102   ;;  %v1398_v2 = vld [vmem:[#allocation9 + $0x58] sm:$0xff] }
 0xffe   :  { %2660 = vmatmul.mubr.msk.f32.vlgmr.msra.gmra.mrb[10].mxu0 %vm425_vm5, %v1140_v4 }
 0xfff   :  { %1482 = vmatprep.mubr.f32.mxu0 %v3384_v1 }
0x10d1   :  { %v1209_v6 = vpop.f32.mrb[10].mxu0 }
0x10d2   :  { %v1211_v7 = vpop.f32.mrb[11].mxu0  ;;  %v1216_v13 = vrot.slane %v1209_v6, 2  ;;  %v2879_v6 = vpack.c.bf16 %v1398_v2, %v1396_v63 }
0x10d3   :  { %v1217_v8 = vrot.slane %v1211_v7, 2  ;;  %v1395_v7 = vld [vmem:[#allocation9 + $0x40] sm:$0xff] }
0x10d4   :  { %v1220_v14 = vadd.f32 %v1216_v13, %v3656_v11  ;;  %v1402_v13 = vld [vmem:[#allocation9 + $0x78] sm:$0xff] }
0x10d5   :  { %v1221_v9 = vadd.f32 %v1217_v8, %v3642_v5  ;;  %v1397_v8 = vld [vmem:[#allocation9 + $0x50] sm:$0xff] }
0x10d6   :  { %v2661_v15 = vmul.f32 -1.442695, %v1220_v14  ;;  %v1399_v14 = vld [vmem:[#allocation9 + $0x60] sm:$0xff] }
0x10d7   :  { %3113 = vtanh.f32 %v1221_v9  ;;  %v2662_v27 = vmul.f32 -1.442695, %v1221_v9  ;;  %v2881_v9 = vpack.c.bf16 %v1397_v8, %v1395_v7 }
0x10d8   :  { %3115 = vpow2.f32 %v2661_v15 }
0x10e1   :  { %v3114_v12 = vpop.eup %3113 }
0x10e2   :  { %1240 = vrot.lane.b32.xlu1 %v3114_v12, %s3385_s9  ;;  %v3116_v16 = vpop.eup %3115  ;;  %v1400_v12 = vld [vmem:[#allocation9 + $0x68] sm:$0xff] }
0x10e3   :  { %v1228_v17 = vadd.f32 1.0, %v3116_v16  ;;  %v2883_v15 = vpack.c.bf16 %v1402_v13, %v1400_v12  ;;  %v1401_v16 = vld [vmem:[#allocation9 + $0x70] sm:$0xff] }
0x10e5   :  { %3117 = vrcp.f32 %v1228_v17  ;;  %v2885_v17 = vpack.c.bf16 %v1401_v16, %v1399_v14 }
0x10ef   :  { %v3118_v18 = vpop.eup %3117 }
0x10f0   :  { %v1238_v22 = vmul.f32 %v3118_v18, %v1236_v21 }
0x1154   :  { %v1241_v19 = vpop.permute.xlu1 %1240 }
0x1155   :  { %v1243_v20 = vmul.f32 %v3118_v18, %v1241_v19 }
0x1157   :  { %1245 = vrot.lane.b32.xlu0 %v1243_v20, %s3385_s9 }
0x11c9   :  { %v1246_v23 = vpop.permute.xlu0 %1245 }
0x11ca   :  { %v1248_v24 = vadd.f32 %v1246_v23, %v1238_v22 }
0x11cc   :  { %3119 = vtanh.f32 %v1248_v24  ;;  %v1356_v59 = vrot.slane %v1248_v24, 7 }
0x11cd   :  { %3121 = vpow2.f32 %v2662_v27  ;;  %v1563_v27 = vld [vmem:[#allocation10 + $0x8] sm:$0xff] }
0x11d6   :  { %v3120_v26 = vpop.eup %3119 }
0x11d7   :  { %1251 = vrot.lane.b32.xlu1 %v3120_v26, %s3385_s9  ;;  %v3122_v29 = vpop.eup %3121 }
0x11d8   :  { %v1229_v30 = vadd.f32 1.0, %v3122_v29  ;;  %v1565_v29 = vld [vmem:[#allocation10 + $0x18] sm:$0xff] }
0x11da   :  { %3123 = vrcp.f32 %v1229_v30  ;;  %v3773_v30 = vpack.c.bf16 %v1565_v29, %v1563_v27 }
0x11e4   :  { %v3124_v32 = vpop.eup %3123 }
0x1249   :  { %v1252_v33 = vpop.permute.xlu1 %1251 }
0x124a   :  { %v1254_v35 = vmul.f32 %v3124_v32, %v1252_v33  ;;  %v1562_v32 = vld [vmem:[#allocation10] sm:$0xff]  ;;  %v1564_v33 = vld [vmem:[#allocation10 + $0x10] sm:$0xff] }
0x124c   :  { %1256 = vst.msk [vmem:[#allocation2] sm:$0x40] %vm4005_vm0, %v1254_v35  ;;  %v1260_v36 = vrot.slane %v1254_v35, 6  ;;  %vm1377_vm0 = vcmask 523527  }
0x124d   :  { %1258 = vst.msk [vmem:[#allocation2 - $0x5] sm:$0x40] %vm4004_vm14, %v1254_v35  ;;  %vm1375_vm14 = vcmask 261127   ;;  %v3775_v35 = vpack.c.bf16 %v1564_v33, %v1562_v32 }
0x124e   :  { %2663 = vmatmul.mubr.msk.f32.vlgmr.msra.gmra.mrb[8].mxu1 %vm425_vm5, %v1260_v36  ;;  %v1567_v36 = vld [vmem:[#allocation10 + $0x28] sm:$0xff] }
0x124f   :  { %1553 = vmatprep.mubr.f32.mxu1 %v3384_v1 }
0x1321   :  { %v1329_v38 = vpop.f32.mrb[8].mxu1 }
0x1322   :  { %v1331_v39 = vpop.f32.mrb[9].mxu1  ;;  %v1336_v45 = vrot.slane %v1329_v38, 1  ;;  %v1569_v38 = vld [vmem:[#allocation10 + $0x38] sm:$0xff] }
0x1323   :  { %v1337_v41 = vrot.slane %v1331_v39, 1  ;;  %v3779_v39 = vpack.c.bf16 %v1569_v38, %v1567_v36 }
0x1324   :  { %v1340_v47 = vadd.f32 %v1336_v45, %v3656_v11  ;;  %v1391_v11 = vld [vmem:[#allocation9 + $0x20] sm:$0xff]  ;;  %v1571_v45 = vld [vmem:[#allocation10 + $0x48] sm:$0xff] }
0x1325   :  { %v1341_v42 = vadd.f32 %v1337_v41, %v3642_v5  ;;  %v1387_v5 = vld [vmem:[#allocation9] sm:$0xff]  ;;  %v2877_v58 = vpack.c.bf16 %v1393_v57, %v1391_v11 }
0x1326   :  { %v2664_v49 = vmul.f32 -1.442695, %v1340_v47  ;;  %v2873_v56 = vpack.c.bf16 %v1389_v46, %v1387_v5  ;;  %v1566_v41 = vld [vmem:[#allocation10 + $0x20] sm:$0xff]  ;;  %v1573_v47 = vld [vmem:[#allocation10 + $0x58] sm:$0xff]  ;;  %v1576_v5 = vld [vmem:[#allocation10 + $0x70] sm:$0xff] }
0x1327   :  { %3125 = vtanh.f32 %v1341_v42  ;;  %v2665_v19 = vmul.f32 -1.442695, %v1341_v42  ;;  %v1568_v42 = vld [vmem:[#allocation10 + $0x30] sm:$0xff]  ;;  %v3793_v53 = vpack.c.bf16 %v1576_v5, %v1574_v43 }
0x1328   :  { %3127 = vpow2.f32 %v2664_v49  ;;  %2874 = vmatpush1.bf16.msra.mxu0 %v2873_v56  ;;  %v3785_v49 = vpack.c.bf16 %v1573_v47, %v1571_v45  ;;  %v1579_v46 = vld [vmem:[%s3987_s2 + $0x1] sm:$0x1]  ;;  %v1408_v56 = vrot.slane %v1403_v54, %v247_v52 }
0x1329   :  { %2876 = vmatprep.subr.bf16.mxu0 %v2875_v25 }
0x132c   :  { %2878 = vmatpush1.bf16.msra.mxu0 %v2877_v58 }
0x132d   :  { %2880 = vmatprep.subr.bf16.mxu0 %v2879_v6 }
0x1330   :  { %2882 = vmatpush1.bf16.msra.mxu0 %v2881_v9 }
0x1331   :  { %v3126_v44 = vpop.eup %3125  ;;  %2884 = vmatprep.subr.bf16.mxu0 %v2883_v15 }
0x1332   :  { %1360 = vrot.lane.b32.xlu0 %v3126_v44, %s3385_s9  ;;  %v3128_v28 = vpop.eup %3127  ;;  %v3781_v44 = vpack.c.bf16 %v1568_v42, %v1566_v41 }
0x1333   :  { %v1348_v31 = vadd.f32 1.0, %v3128_v28  ;;  %v1570_v28 = vld [vmem:[#allocation10 + $0x40] sm:$0xff] }
0x1334   :  { %2886 = vmatpush1.bf16.msra.mxu0 %v2885_v17 }
0x1335   :  { %3129 = vrcp.f32 %v1348_v31  ;;  %2904 = vmatprep.subr.bf16.mxu0 %v3773_v30  ;;  %v1572_v31 = vld [vmem:[#allocation10 + $0x50] sm:$0xff] }
0x133f   :  { %v3130_v34 = vpop.eup %3129 }
0x1340   :  { %v1358_v61 = vmul.f32 %v3130_v34, %v1356_v59 }
0x13a4   :  { %v1361_v51 = vpop.permute.xlu0 %1360 }
0x13a5   :  { %v1363_v37 = vmul.f32 %v3130_v34, %v1361_v51  ;;  %v3787_v34 = vpack.c.bf16 %v1572_v31, %v1570_v28  ;;  %v1575_v51 = vld [vmem:[#allocation10 + $0x68] sm:$0xff] }
0x13a7   :  { %1365 = vrot.lane.b32.xlu1 %v1363_v37, %s3385_s9  ;;  %v1577_v37 = vld [vmem:[#allocation10 + $0x78] sm:$0xff] }
0x13a8   :  { %v3791_v40 = vpack.c.bf16 %v1577_v37, %v1575_v51 }
0x1419   :  { %v1366_v62 = vpop.permute.xlu1 %1365 }
0x141a   :  { %v3761_v4 = vadd.f32 %v1366_v62, %v1358_v61 }
0x141c   :  { %3131 = vtanh.f32 %v3761_v4 }
0x141d   :  { %3133 = vpow2.f32 %v2665_v19 }
0x1426   :  { %v3132_v18 = vpop.eup %3131 }
0x1427   :  { %1371 = vrot.lane.b32.xlu0 %v3132_v18, %s3385_s9  ;;  %v3134_v20 = vpop.eup %3133 }
0x1428   :  { %v1349_v21 = vadd.f32 1.0, %v3134_v20 }
0x142a   :  { %3135 = vrcp.f32 %v1349_v21 }
0x142b   :  { %1670 = vrot.lane.b32.xlu0 %v1579_v46, %s3385_s9 }
0x1434   :  { %v3136_v22 = vpop.eup %3135 }
0x1499   :  { %v1372_v23 = vpop.permute.xlu0 %1371 }
0x149a   :  { %v1374_v24 = vmul.f32 %v3136_v22, %v1372_v23 }
0x149c   :  { %1376 = vst.msk [vmem:[#allocation2] sm:$0x80] %vm1375_vm14, %v1374_v24 }
0x149d   :  { %1378 = vst.msk [vmem:[#allocation2 - $0x7] sm:$0x80] %vm1377_vm0, %v1374_v24  ;;  %v1671_v14 = vpop.permute.xlu0 %1670 }
0x149e   :  { %1380 = vst.msk [vmem:[%s3999_s14 - $0x7] sm:$0x80] %vm1379_vm13, %v1374_v24 }
0x14a4   :  { %v1386_v26 = vld [vmem:[#allocation2] sm:$0xff] }
0x14a5   :  { %2666 = vmatmul.mubr.msk.f32.vlgmr.msra.gmra.mrb[12].mxu0 %vm425_vm5, %v1386_v26 }
0x14a6   :  { %1759 = vmatprep.mubr.f32.mxu0 %v3384_v1  ;;  %2906 = vmatpush1.bf16.msra.mxu0 %v3775_v35 }
0x14a7   :  { %2908 = vmatprep.subr.bf16.mxu0 %v3779_v39 }
0x14aa   :  { %2910 = vmatpush1.bf16.msra.mxu0 %v3781_v44 }
0x14ab   :  { %2912 = vmatprep.subr.bf16.mxu0 %v3785_v49 }
0x14ae   :  { %2914 = vmatpush1.bf16.msra.mxu0 %v3787_v34 }
0x14af   :  { %2916 = vmatprep.subr.bf16.mxu0 %v3791_v40 }
0x14b2   :  { %2918 = vmatpush1.bf16.msra.mxu0 %v3793_v53 }
0x14b3   :  { %2936 = vmatprep.subr.bf16.mxu0 %v3773_v30 }
0x1578   :  { %v1484_v25 = vpop.f32.mrb[12].mxu0 }
0x1579   :  { %v1486_v11 = vpop.f32.mrb[13].mxu0  ;;  %v1485_v58 = vadd.f32 %v1484_v25, %v1408_v56 }
0x157a   :  { %v1487_v57 = vadd.f32 %v1486_v11, %v1412_v55 }
0x157c   :  { %1489 = vmatprep.subr.mxu1 %v1487_v57 }
0x157d   :  { %1490 = vmatpush1.msra.mxu1 %v1485_v58 }
0x157e   :  { %2667 = vmatmul.mubr.msk.f32.vlgmr.msra.gmra.mrb[10].mxu1 %vm330_vm4, %v3609_v60  ;;  %2888 = vmatprep.subr.bf16.mxu1 %v3773_v30  ;;  %vm4011_vm4 = vcmask 520452  }
0x157f   :  { %2890 = vmatpush1.bf16.msra.mxu1 %v3775_v35  ;;  %1647 = vmatprep.mubr.f32.mxu1 %v3384_v1 }
0x1580   :  { %2892 = vmatprep.subr.bf16.mxu1 %v3779_v39 }
0x1583   :  { %2894 = vmatpush1.bf16.msra.mxu1 %v3781_v44 }
0x1584   :  { %2896 = vmatprep.subr.bf16.mxu1 %v3785_v49 }
0x1587   :  { %2898 = vmatpush1.bf16.msra.mxu1 %v3787_v34 }
0x1588   :  { %2900 = vmatprep.subr.bf16.mxu1 %v3791_v40 }
0x158b   :  { %2902 = vmatpush1.bf16.msra.mxu1 %v3793_v53 }
0x158c   :  { %2920 = vmatprep.subr.bf16.mxu1 %v3773_v30 }
0x158e   :  { %2668 = vmatmul.mubr.msk.f32.vlgmr.msra.gmra.mrb[12].mxu1 %vm425_vm5, %v1578_v48 }
0x158f   :  { %2922 = vmatpush1.bf16.msra.mxu1 %v3775_v35  ;;  %1877 = vmatprep.mubr.f32.mxu1 %v3384_v1 }
0x1590   :  { %2924 = vmatprep.subr.bf16.mxu1 %v3779_v39 }
0x1593   :  { %2926 = vmatpush1.bf16.msra.mxu1 %v3781_v44 }
0x1594   :  { %2928 = vmatprep.subr.bf16.mxu1 %v3785_v49 }
0x1597   :  { %2930 = vmatpush1.bf16.msra.mxu1 %v3787_v34 }
0x1598   :  { %2932 = vmatprep.subr.bf16.mxu1 %v3791_v40 }
0x159b   :  { %2934 = vmatpush1.bf16.msra.mxu1 %v3793_v53 }
0x159c   :  { %2952 = vmatprep.subr.bf16.mxu1 %v3773_v30 }
0x1651   :  { %v1555_v50 = vpop.f32.mrb[10].mxu1 }
0x1652   :  { %v1557_v52 = vpop.f32.mrb[11].mxu1  ;;  %v3842_v2 = vsel %vm3650_vm15, %v1485_v58, %v1555_v50  ;;  %vm4013_vm15 = vcmask 521477  }
0x1653   :  { %v3836_v59 = vsel %vm3636_vm10, %v1487_v57, %v1557_v52  ;;  %vm4012_vm10 = vcmask 259077  }
0x1661   :  { %v1649_v60 = vpop.f32.mrb[12].mxu1 }
0x1662   :  { %v1651_v61 = vpop.f32.mrb[13].mxu1  ;;  %v1654_v6 = vadd.f32 %v1649_v60, %v3842_v2 }
0x1663   :  { %v1655_v62 = vadd.f32 %v1651_v61, %v3836_v59 }
0x1664   :  { %v2669_v7 = vmul.f32 -1.442695, %v1654_v6 }
0x1665   :  { %3137 = vtanh.f32 %v1655_v62  ;;  %v2670_v18 = vmul.f32 -1.442695, %v1655_v62 }
0x1666   :  { %3139 = vpow2.f32 %v2669_v7 }
0x166f   :  { %v3138_v63 = vpop.eup %3137 }
0x1670   :  { %1675 = vrot.lane.b32.xlu1 %v3138_v63, %s3385_s9  ;;  %v3140_v8 = vpop.eup %3139 }
0x1671   :  { %v1662_v9 = vadd.f32 1.0, %v3140_v8 }
0x1673   :  { %3141 = vrcp.f32 %v1662_v9 }
0x167d   :  { %v3142_v3 = vpop.eup %3141 }
0x167e   :  { %v1673_v15 = vmul.f32 %v3142_v3, %v1671_v14 }
0x16e2   :  { %v1676_v12 = vpop.permute.xlu1 %1675 }
0x16e3   :  { %v1678_v13 = vmul.f32 %v3142_v3, %v1676_v12 }
0x16e5   :  { %1680 = vrot.lane.b32.xlu1 %v1678_v13, %s3385_s9 }
0x1757   :  { %v1681_v16 = vpop.permute.xlu1 %1680 }
0x1758   :  { %v1683_v17 = vadd.f32 %v1681_v16, %v1673_v15 }
0x175a   :  { %3143 = vtanh.f32 %v1683_v17  ;;  %v1788_v31 = vrot.slane %v1683_v17, 7 }
0x175b   :  { %3145 = vpow2.f32 %v2670_v18 }
0x1764   :  { %v3144_v10 = vpop.eup %3143 }
0x1765   :  { %1686 = vrot.lane.b32.xlu0 %v3144_v10, %s3385_s9  ;;  %v3146_v19 = vpop.eup %3145 }
0x1766   :  { %v1663_v20 = vadd.f32 1.0, %v3146_v19 }
0x1768   :  { %3147 = vrcp.f32 %v1663_v20 }
0x1772   :  { %v3148_v21 = vpop.eup %3147 }
0x17d7   :  { %v1687_v22 = vpop.permute.xlu0 %1686 }
0x17d8   :  { %v1689_v23 = vmul.f32 %v3148_v21, %v1687_v22 }
0x17da   :  { %1690 = vst.msk [vmem:[#allocation3] sm:$0x1] %vm536_vm1, %v1689_v23  ;;  %2671 = vmatmul.mubr.msk.f32.vlgmr.msra.gmra.mrb[14].mxu0 %vm425_vm5, %v1689_v23  ;;  %vm4014_vm1 = vmmov 0  }
0x17db   :  { %1691 = vst.msk [vmem:[#allocation3 + $0x7] sm:$0x1] %vm538_vm2, %v1689_v23  ;;  %2938 = vmatpush1.bf16.msra.mxu0 %v3775_v35  ;;  %1995 = vmatprep.mubr.f32.mxu0 %v3384_v1  ;;  %vm4015_vm2 = vcmask 260102  }
0x17dc   :  { %2940 = vmatprep.subr.bf16.mxu0 %v3779_v39 }
0x17df   :  { %2942 = vmatpush1.bf16.msra.mxu0 %v3781_v44 }
0x17e0   :  { %2944 = vmatprep.subr.bf16.mxu0 %v3785_v49 }
0x17e3   :  { %2946 = vmatpush1.bf16.msra.mxu0 %v3787_v34 }
0x17e4   :  { %2948 = vmatprep.subr.bf16.mxu0 %v3791_v40 }
0x17e7   :  { %2950 = vmatpush1.bf16.msra.mxu0 %v3793_v53 }
0x17e8   :  { %2968 = vmatprep.subr.bf16.mxu0 %v3773_v30 }
0x18ad   :  { %v1761_v24 = vpop.f32.mrb[14].mxu0 }
0x18ae   :  { %v1763_v26 = vpop.f32.mrb[15].mxu0  ;;  %v1768_v33 = vrot.slane %v1761_v24, 7 }
0x18af   :  { %v1769_v27 = vrot.slane %v1763_v26, 7 }
0x18b0   :  { %v1772_v36 = vadd.f32 %v1768_v33, %v3842_v2 }
0x18b1   :  { %v1773_v29 = vadd.f32 %v1769_v27, %v3836_v59 }
0x18b2   :  { %v2672_v38 = vmul.f32 -1.442695, %v1772_v36 }
0x18b3   :  { %3149 = vtanh.f32 %v1773_v29  ;;  %v2673_v46 = vmul.f32 -1.442695, %v1773_v29 }
0x18b4   :  { %3151 = vpow2.f32 %v2672_v38 }
0x18bd   :  { %v3150_v32 = vpop.eup %3149 }
0x18be   :  { %1792 = vrot.lane.b32.xlu1 %v3150_v32, %s3385_s9  ;;  %v3152_v41 = vpop.eup %3151 }
0x18bf   :  { %v1780_v42 = vadd.f32 1.0, %v3152_v41 }
0x18c1   :  { %3153 = vrcp.f32 %v1780_v42 }
0x18cb   :  { %v3154_v45 = vpop.eup %3153 }
0x18cc   :  { %v1790_v51 = vmul.f32 %v3154_v45, %v1788_v31 }
0x1930   :  { %v1793_v47 = vpop.permute.xlu1 %1792 }
0x1931   :  { %v1795_v28 = vmul.f32 %v3154_v45, %v1793_v47 }
0x1933   :  { %1797 = vrot.lane.b32.xlu0 %v1795_v28, %s3385_s9 }
0x19a5   :  { %v1798_v37 = vpop.permute.xlu0 %1797 }
0x19a6   :  { %v1800_v43 = vadd.f32 %v1798_v37, %v1790_v51 }
0x19a8   :  { %3155 = vtanh.f32 %v1800_v43  ;;  %v1906_v12 = vrot.slane %v1800_v43, 7 }
0x19a9   :  { %3157 = vpow2.f32 %v2673_v46 }
0x19b2   :  { %v3156_v5 = vpop.eup %3155 }
0x19b3   :  { %1803 = vrot.lane.b32.xlu1 %v3156_v5, %s3385_s9  ;;  %v3158_v54 = vpop.eup %3157 }
0x19b4   :  { %v1781_v55 = vadd.f32 1.0, %v3158_v54 }
0x19b6   :  { %3159 = vrcp.f32 %v1781_v55 }
0x19c0   :  { %v3160_v56 = vpop.eup %3159 }
0x1a25   :  { %v1804_v25 = vpop.permute.xlu1 %1803 }
0x1a26   :  { %v1806_v11 = vmul.f32 %v3160_v56, %v1804_v25 }
0x1a28   :  { %1807 = vst.msk [vmem:[#allocation3] sm:$0x2] %vm655_vm3, %v1806_v11  ;;  %v1810_v57 = vrot.slane %v1806_v11, 1  ;;  %vm4016_vm3 = vcmask 522502  }
0x1a29   :  { %1808 = vst.msk [vmem:[#allocation3 + $0x5] sm:$0x2] %vm657_vm6, %v1806_v11 }
0x1a2a   :  { %2674 = vmatmul.mubr.msk.f32.vlgmr.msra.gmra.mrb[14].mxu1 %vm425_vm5, %v1810_v57 }
0x1a2b   :  { %2954 = vmatpush1.bf16.msra.mxu1 %v3775_v35  ;;  %2113 = vmatprep.mubr.f32.mxu1 %v3384_v1 }
0x1a2c   :  { %2956 = vmatprep.subr.bf16.mxu1 %v3779_v39 }
0x1a2f   :  { %2958 = vmatpush1.bf16.msra.mxu1 %v3781_v44 }
0x1a30   :  { %2960 = vmatprep.subr.bf16.mxu1 %v3785_v49 }
0x1a33   :  { %2962 = vmatpush1.bf16.msra.mxu1 %v3787_v34 }
0x1a34   :  { %2964 = vmatprep.subr.bf16.mxu1 %v3791_v40 }
0x1a37   :  { %2966 = vmatpush1.bf16.msra.mxu1 %v3793_v53 }
0x1a38   :  { %2984 = vmatprep.subr.bf16.mxu1 %v3773_v30 }
0x1afd   :  { %v1879_v58 = vpop.f32.mrb[14].mxu1 }
0x1afe   :  { %v1881_v48 = vpop.f32.mrb[15].mxu1  ;;  %v1886_v61 = vrot.slane %v1879_v58, 6 }
0x1aff   :  { %v1887_v50 = vrot.slane %v1881_v48, 6 }
0x1b00   :  { %v1890_v62 = vadd.f32 %v1886_v61, %v3842_v2 }
0x1b01   :  { %v1891_v52 = vadd.f32 %v1887_v50, %v3836_v59 }
0x1b02   :  { %v2675_v63 = vmul.f32 -1.442695, %v1890_v62 }
0x1b03   :  { %3161 = vtanh.f32 %v1891_v52  ;;  %v2676_v17 = vmul.f32 -1.442695, %v1891_v52 }
0x1b04   :  { %3163 = vpow2.f32 %v2675_v63 }
0x1b0d   :  { %v3162_v60 = vpop.eup %3161 }
0x1b0e   :  { %1910 = vrot.lane.b32.xlu0 %v3162_v60, %s3385_s9  ;;  %v3164_v6 = vpop.eup %3163 }
0x1b0f   :  { %v1898_v7 = vadd.f32 1.0, %v3164_v6 }
0x1b11   :  { %3165 = vrcp.f32 %v1898_v7 }
0x1b1b   :  { %v3166_v8 = vpop.eup %3165 }
0x1b1c   :  { %v1908_v13 = vmul.f32 %v3166_v8, %v1906_v12 }
0x1b80   :  { %v1911_v9 = vpop.permute.xlu0 %1910 }
0x1b81   :  { %v1913_v3 = vmul.f32 %v3166_v8, %v1911_v9 }
0x1b83   :  { %1915 = vrot.lane.b32.xlu1 %v1913_v3, %s3385_s9 }
0x1bf5   :  { %v1916_v14 = vpop.permute.xlu1 %1915 }
0x1bf6   :  { %v1918_v15 = vadd.f32 %v1916_v14, %v1908_v13 }
0x1bf8   :  { %3167 = vtanh.f32 %v1918_v15  ;;  %v2024_v47 = vrot.slane %v1918_v15, 7 }
0x1bf9   :  { %3169 = vpow2.f32 %v2676_v17 }
0x1c02   :  { %v3168_v16 = vpop.eup %3167 }
0x1c03   :  { %1921 = vrot.lane.b32.xlu0 %v3168_v16, %s3385_s9  ;;  %v3170_v10 = vpop.eup %3169 }
0x1c04   :  { %v1899_v18 = vadd.f32 1.0, %v3170_v10 }
0x1c06   :  { %3171 = vrcp.f32 %v1899_v18 }
0x1c10   :  { %v3172_v19 = vpop.eup %3171 }
0x1c75   :  { %v1922_v20 = vpop.permute.xlu0 %1921 }
0x1c76   :  { %v1924_v21 = vmul.f32 %v3172_v19, %v1922_v20 }
0x1c78   :  { %1925 = vst.msk [vmem:[#allocation3] sm:$0x4] %vm775_vm7, %v1924_v21  ;;  %v1928_v22 = vrot.slane %v1924_v21, 2 }
0x1c79   :  { %1926 = vst.msk [vmem:[#allocation3 + $0x3] sm:$0x4] %vm777_vm8, %v1924_v21 }
0x1c7a   :  { %2677 = vmatmul.mubr.msk.f32.vlgmr.msra.gmra.mrb[16].mxu0 %vm425_vm5, %v1928_v22 }
0x1c7b   :  { %2970 = vmatpush1.bf16.msra.mxu0 %v3775_v35  ;;  %2231 = vmatprep.mubr.f32.mxu0 %v3384_v1 }
0x1c7c   :  { %2972 = vmatprep.subr.bf16.mxu0 %v3779_v39 }
0x1c7f   :  { %2974 = vmatpush1.bf16.msra.mxu0 %v3781_v44 }
0x1c80   :  { %2976 = vmatprep.subr.bf16.mxu0 %v3785_v49 }
0x1c83   :  { %2978 = vmatpush1.bf16.msra.mxu0 %v3787_v34 }
0x1c84   :  { %2980 = vmatprep.subr.bf16.mxu0 %v3791_v40 }
0x1c87   :  { %2982 = vmatpush1.bf16.msra.mxu0 %v3793_v53 }
0x1c88   :  { %3000 = vmatprep.subr.bf16.mxu0 %v3773_v30 }
0x1d4d   :  { %v1997_v23 = vpop.f32.mrb[16].mxu0 }
0x1d4e   :  { %v1999_v24 = vpop.f32.mrb[17].mxu0  ;;  %v2004_v32 = vrot.slane %v1997_v23, 5 }
0x1d4f   :  { %v2005_v26 = vrot.slane %v1999_v24, 5 }
0x1d50   :  { %v2008_v33 = vadd.f32 %v2004_v32, %v3842_v2 }
0x1d51   :  { %v2009_v27 = vadd.f32 %v2005_v26, %v3836_v59 }
0x1d52   :  { %v2678_v36 = vmul.f32 -1.442695, %v2008_v33 }
0x1d53   :  { %3173 = vtanh.f32 %v2009_v27  ;;  %v2679_v43 = vmul.f32 -1.442695, %v2009_v27 }
0x1d54   :  { %3175 = vpow2.f32 %v2678_v36 }
0x1d5d   :  { %v3174_v29 = vpop.eup %3173 }
0x1d5e   :  { %2028 = vrot.lane.b32.xlu1 %v3174_v29, %s3385_s9  ;;  %v3176_v38 = vpop.eup %3175 }
0x1d5f   :  { %v2016_v41 = vadd.f32 1.0, %v3176_v38 }
0x1d61   :  { %3177 = vrcp.f32 %v2016_v41 }
0x1d6b   :  { %v3178_v42 = vpop.eup %3177 }
0x1d6c   :  { %v2026_v28 = vmul.f32 %v3178_v42, %v2024_v47 }
0x1dd0   :  { %v2029_v45 = vpop.permute.xlu1 %2028 }
0x1dd1   :  { %v2031_v30 = vmul.f32 %v3178_v42, %v2029_v45 }
0x1dd3   :  { %2033 = vrot.lane.b32.xlu0 %v2031_v30, %s3385_s9 }
0x1e45   :  { %v2034_v31 = vpop.permute.xlu0 %2033 }
0x1e46   :  { %v2036_v51 = vadd.f32 %v2034_v31, %v2026_v28 }
0x1e48   :  { %3179 = vtanh.f32 %v2036_v51  ;;  %v2142_v9 = vrot.slane %v2036_v51, 7 }
0x1e49   :  { %3181 = vpow2.f32 %v2679_v43 }
0x1e52   :  { %v3180_v37 = vpop.eup %3179 }
0x1e53   :  { %2039 = vrot.lane.b32.xlu1 %v3180_v37, %s3385_s9  ;;  %v3182_v5 = vpop.eup %3181 }
0x1e54   :  { %v2017_v46 = vadd.f32 1.0, %v3182_v5 }
0x1e56   :  { %3183 = vrcp.f32 %v2017_v46 }
0x1e60   :  { %v3184_v54 = vpop.eup %3183 }
0x1ec5   :  { %v2040_v55 = vpop.permute.xlu1 %2039 }
0x1ec6   :  { %v2042_v56 = vmul.f32 %v3184_v54, %v2040_v55 }
0x1ec8   :  { %2043 = vst.msk [vmem:[#allocation3] sm:$0x8] %vm895_vm9, %v2042_v56  ;;  %v2046_v25 = vrot.slane %v2042_v56, 3 }
0x1ec9   :  { %2044 = vst.msk [vmem:[#allocation3 + $0x1] sm:$0x8] %vm897_vm11, %v2042_v56 }
0x1eca   :  { %2680 = vmatmul.mubr.msk.f32.vlgmr.msra.gmra.mrb[16].mxu1 %vm425_vm5, %v2046_v25 }
0x1ecb   :  { %2986 = vmatpush1.bf16.msra.mxu1 %v3775_v35  ;;  %2349 = vmatprep.mubr.f32.mxu1 %v3384_v1 }
0x1ecc   :  { %2988 = vmatprep.subr.bf16.mxu1 %v3779_v39 }
0x1ecf   :  { %2990 = vmatpush1.bf16.msra.mxu1 %v3781_v44 }
0x1ed0   :  { %2992 = vmatprep.subr.bf16.mxu1 %v3785_v49 }
0x1ed3   :  { %2994 = vmatpush1.bf16.msra.mxu1 %v3787_v34 }
0x1ed4   :  { %2996 = vmatprep.subr.bf16.mxu1 %v3791_v40 }
0x1ed7   :  { %2998 = vmatpush1.bf16.msra.mxu1 %v3793_v53 }
0x1ed8   :  { %3015 = vmatprep.subr.bf16.mxu1 %v3382_v0 }
0x1f9d   :  { %v2115_v11 = vpop.f32.mrb[16].mxu1 }
0x1f9e   :  { %v2117_v57 = vpop.f32.mrb[17].mxu1  ;;  %v2122_v52 = vrot.slane %v2115_v11, 4 }
0x1f9f   :  { %v2123_v58 = vrot.slane %v2117_v57, 4 }
0x1fa0   :  { %v2126_v60 = vadd.f32 %v2122_v52, %v3842_v2 }
0x1fa1   :  { %v2127_v48 = vadd.f32 %v2123_v58, %v3836_v59 }
0x1fa2   :  { %v2681_v61 = vmul.f32 -1.442695, %v2126_v60 }
0x1fa3   :  { %3185 = vtanh.f32 %v2127_v48  ;;  %v2682_v15 = vmul.f32 -1.442695, %v2127_v48 }
0x1fa4   :  { %3187 = vpow2.f32 %v2681_v61 }
0x1fad   :  { %v3186_v50 = vpop.eup %3185 }
0x1fae   :  { %2146 = vrot.lane.b32.xlu0 %v3186_v50, %s3385_s9  ;;  %v3188_v62 = vpop.eup %3187 }
0x1faf   :  { %v2134_v63 = vadd.f32 1.0, %v3188_v62 }
0x1fb1   :  { %3189 = vrcp.f32 %v2134_v63 }
0x1fbb   :  { %v3190_v6 = vpop.eup %3189 }
0x1fbc   :  { %v2144_v3 = vmul.f32 %v3190_v6, %v2142_v9 }
0x2020   :  { %v2147_v7 = vpop.permute.xlu0 %2146 }
0x2021   :  { %v2149_v8 = vmul.f32 %v3190_v6, %v2147_v7 }
0x2023   :  { %2151 = vrot.lane.b32.xlu1 %v2149_v8, %s3385_s9 }
0x2095   :  { %v2152_v12 = vpop.permute.xlu1 %2151 }
0x2096   :  { %v2154_v13 = vadd.f32 %v2152_v12, %v2144_v3 }
0x2098   :  { %3191 = vtanh.f32 %v2154_v13  ;;  %v2260_v29 = vrot.slane %v2154_v13, 7 }
0x2099   :  { %3193 = vpow2.f32 %v2682_v15 }
0x20a2   :  { %v3192_v14 = vpop.eup %3191 }
0x20a3   :  { %2157 = vrot.lane.b32.xlu0 %v3192_v14, %s3385_s9  ;;  %v3194_v16 = vpop.eup %3193 }
0x20a4   :  { %v2135_v17 = vadd.f32 1.0, %v3194_v16 }
0x20a6   :  { %3195 = vrcp.f32 %v2135_v17 }
0x20b0   :  { %v3196_v10 = vpop.eup %3195 }
0x2115   :  { %v2158_v18 = vpop.permute.xlu0 %2157 }
0x2116   :  { %v2160_v19 = vmul.f32 %v3196_v10, %v2158_v18 }
0x2118   :  { %2161 = vst.msk [vmem:[#allocation3] sm:$0x10] %vm1015_vm12, %v2160_v19  ;;  %v2164_v20 = vrot.slane %v2160_v19, 4 }
0x2119   :  { %2162 = vst.msk [vmem:[#allocation3 - $0x1] sm:$0x10] %vm4011_vm4, %v2160_v19 }
0x211a   :  { %2683 = vmatmul.mubr.msk.f32.vlgmr.msra.gmra.mrb[18].mxu0 %vm425_vm5, %v2164_v20 }
0x211b   :  { %3002 = vmatpush1.bf16.msra.mxu0 %v3775_v35  ;;  %2467 = vmatprep.mubr.f32.mxu0 %v3384_v1 }
0x211c   :  { %3004 = vmatprep.subr.bf16.mxu0 %v3779_v39 }
0x211f   :  { %3006 = vmatpush1.bf16.msra.mxu0 %v3781_v44 }
0x2120   :  { %3008 = vmatprep.subr.bf16.mxu0 %v3785_v49 }
0x2123   :  { %3010 = vmatpush1.bf16.msra.mxu0 %v3787_v34 }
0x2124   :  { %3012 = vmatprep.subr.bf16.mxu0 %v3791_v40 }
0x2127   :  { %3014 = vmatpush1.bf16.msra.mxu0 %v3793_v53 }
0x21ed   :  { %v2233_v21 = vpop.f32.mrb[18].mxu0 }
0x21ee   :  { %v2235_v22 = vpop.f32.mrb[19].mxu0  ;;  %v2240_v39 = vrot.slane %v2233_v21, 3 }
0x21ef   :  { %v2241_v23 = vrot.slane %v2235_v22, 3 }
0x21f0   :  { %v2244_v44 = vadd.f32 %v2240_v39, %v3842_v2 }
0x21f1   :  { %v2245_v24 = vadd.f32 %v2241_v23, %v3836_v59 }
0x21f2   :  { %v2684_v26 = vmul.f32 -1.442695, %v2244_v44  ;;  %v2527_v44 = vld [vmem:[#allocation12 + $0x18] sm:$0xff] }
0x21f3   :  { %3197 = vtanh.f32 %v2245_v24  ;;  %v2685_v41 = vmul.f32 -1.442695, %v2245_v24  ;;  %v2525_v24 = vld [vmem:[#allocation12 + $0x8] sm:$0xff] }
0x21f4   :  { %3199 = vpow2.f32 %v2684_v26 }
0x21fd   :  { %v3198_v35 = vpop.eup %3197 }
0x21fe   :  { %2264 = vrot.lane.b32.xlu1 %v3198_v35, %s3385_s9  ;;  %v3200_v49 = vpop.eup %3199  ;;  %v2526_v35 = vld [vmem:[#allocation12 + $0x10] sm:$0xff] }
0x21ff   :  { %v2252_v34 = vadd.f32 1.0, %v3200_v49 }
0x2201   :  { %3201 = vrcp.f32 %v2252_v34 }
0x220b   :  { %v3202_v40 = vpop.eup %3201 }
0x220c   :  { %v2262_v32 = vmul.f32 %v3202_v40, %v2260_v29 }
0x2270   :  { %v2265_v27 = vpop.permute.xlu1 %2264 }
0x2271   :  { %v2267_v53 = vmul.f32 %v3202_v40, %v2265_v27  ;;  %v2528_v27 = vld [vmem:[#allocation12 + $0x20] sm:$0xff] }
0x2273   :  { %2269 = vrot.lane.b32.xlu0 %v2267_v53, %s3385_s9  ;;  %v2529_v53 = vld [vmem:[#allocation12 + $0x28] sm:$0xff] }
0x2274   :  { %v3022_v29 = vpack.c.bf16 %v2529_v53, %v2528_v27 }
0x22e5   :  { %v2270_v33 = vpop.permute.xlu0 %2269 }
0x22e6   :  { %v2272_v36 = vadd.f32 %v2270_v33, %v2262_v32  ;;  %v2530_v32 = vld [vmem:[#allocation12 + $0x30] sm:$0xff]  ;;  %v2531_v33 = vld [vmem:[#allocation12 + $0x38] sm:$0xff] }
0x22e8   :  { %3203 = vtanh.f32 %v2272_v36  ;;  %v2378_v48 = vrot.slane %v2272_v36, 7  ;;  %v3025_v36 = vpack.c.bf16 %v2531_v33, %v2530_v32 }
0x22e9   :  { %3205 = vpow2.f32 %v2685_v41 }
0x22f2   :  { %v3204_v38 = vpop.eup %3203 }
0x22f3   :  { %2275 = vrot.lane.b32.xlu1 %v3204_v38, %s3385_s9  ;;  %v3206_v42 = vpop.eup %3205 }
0x22f4   :  { %v2253_v45 = vadd.f32 1.0, %v3206_v42 }
0x22f6   :  { %3207 = vrcp.f32 %v2253_v45 }
0x2300   :  { %v3208_v30 = vpop.eup %3207 }
0x2365   :  { %v2276_v47 = vpop.permute.xlu1 %2275 }
0x2366   :  { %v2278_v28 = vmul.f32 %v3208_v30, %v2276_v47 }
0x2368   :  { %2279 = vst.msk [vmem:[#allocation3] sm:$0x20] %vm4012_vm10, %v2278_v28  ;;  %v2282_v31 = vrot.slane %v2278_v28, 5 }
0x2369   :  { %2280 = vst.msk [vmem:[#allocation3 - $0x3] sm:$0x20] %vm4013_vm15, %v2278_v28 }
0x236a   :  { %2686 = vmatmul.mubr.msk.f32.vlgmr.msra.gmra.mrb[18].mxu1 %vm425_vm5, %v2282_v31 }
0x236b   :  { %2729 = vmatprep.mubr.msk.f32.mxu1 %vm4014_vm1, %v3384_v1 }
0x243d   :  { %v2351_v51 = vpop.f32.mrb[18].mxu1 }
0x243e   :  { %v2353_v37 = vpop.f32.mrb[19].mxu1  ;;  %v2358_v54 = vrot.slane %v2351_v51, 2  ;;  %v2692_v51 = vld [vmem:[%s3997_s12] ss:$0 sm:$0xff] }
0x243f   :  { %v2359_v43 = vrot.slane %v2353_v37, 2 }
0x2440   :  { %v2362_v55 = vadd.f32 %v2358_v54, %v3842_v2 }
0x2441   :  { %v2363_v5 = vadd.f32 %v2359_v43, %v3836_v59 }
0x2442   :  { %v2687_v56 = vmul.f32 -1.442695, %v2362_v55 }
0x2443   :  { %3209 = vtanh.f32 %v2363_v5  ;;  %v2688_v62 = vmul.f32 -1.442695, %v2363_v5 }
0x2444   :  { %3211 = vpow2.f32 %v2687_v56 }
0x244d   :  { %v3210_v46 = vpop.eup %3209 }
0x244e   :  { %2382 = vrot.lane.b32.xlu0 %v3210_v46, %s3385_s9  ;;  %v3212_v25 = vpop.eup %3211 }
0x244f   :  { %v2370_v11 = vadd.f32 1.0, %v3212_v25 }
0x2451   :  { %3213 = vrcp.f32 %v2370_v11 }
0x245b   :  { %v3214_v57 = vpop.eup %3213 }
0x245c   :  { %v2380_v50 = vmul.f32 %v3214_v57, %v2378_v48 }
0x24c0   :  { %v2383_v58 = vpop.permute.xlu0 %2382 }
0x24c1   :  { %v2385_v1 = vmul.f32 %v3214_v57, %v2383_v58 }
0x24c3   :  { %2387 = vrot.lane.b32.xlu1 %v2385_v1, %s3385_s9 }
0x2535   :  { %v2388_v52 = vpop.permute.xlu1 %2387 }
0x2536   :  { %v2390_v60 = vadd.f32 %v2388_v52, %v2380_v50 }
0x2538   :  { %3215 = vtanh.f32 %v2390_v60  ;;  %v2496_v26 = vrot.slane %v2390_v60, 7 }
0x2539   :  { %3217 = vpow2.f32 %v2688_v62 }
0x2542   :  { %v3216_v61 = vpop.eup %3215 }
0x2543   :  { %2393 = vrot.lane.b32.xlu0 %v3216_v61, %s3385_s9  ;;  %v3218_v63 = vpop.eup %3217 }
0x2544   :  { %v2371_v6 = vadd.f32 1.0, %v3218_v63 }
0x2546   :  { %3219 = vrcp.f32 %v2371_v6 }
0x2550   :  { %v3220_v7 = vpop.eup %3219 }
0x25b5   :  { %v2394_v8 = vpop.permute.xlu0 %2393 }
0x25b6   :  { %v2396_v9 = vmul.f32 %v3220_v7, %v2394_v8 }
0x25b8   :  { %2397 = vst.msk [vmem:[#allocation3] sm:$0x40] %vm4015_vm2, %v2396_v9  ;;  %v2400_v3 = vrot.slane %v2396_v9, 6 }
0x25b9   :  { %2398 = vst.msk [vmem:[#allocation3 - $0x5] sm:$0x40] %vm4016_vm3, %v2396_v9 }
0x25ba   :  { %2689 = vmatmul.mubr.msk.f32.vlgmr.msra.gmra.mrb[20].mxu0 %vm425_vm5, %v2400_v3 }
0x268d   :  { %v2469_v12 = vpop.f32.mrb[20].mxu0 }
0x268e   :  { %v2471_v13 = vpop.f32.mrb[21].mxu0  ;;  %v2476_v17 = vrot.slane %v2469_v12, 1 }
0x268f   :  { %v2477_v14 = vrot.slane %v2471_v13, 1 }
0x2690   :  { %v2480_v10 = vadd.f32 %v2476_v17, %v3842_v2  ;;  %v3019_v2 = vpack.c.bf16 %v2527_v44, %v2526_v35 }
0x2691   :  { %v2481_v15 = vadd.f32 %v2477_v14, %v3836_v59  ;;  %v2524_v59 = vld [vmem:[#allocation12] sm:$0xff] }
0x2692   :  { %v2690_v18 = vmul.f32 -1.442695, %v2480_v10  ;;  %v3016_v39 = vpack.c.bf16 %v2525_v24, %v2524_v59 }
0x2693   :  { %3221 = vtanh.f32 %v2481_v15  ;;  %v2691_v41 = vmul.f32 -1.442695, %v2481_v15 }
0x2694   :  { %3223 = vpow2.f32 %v2690_v18  ;;  %3017 = vmatpush3.bf16.msra.mxu1 %v3016_v39 }
0x2695   :  { %3018 = vmatprep.subr.bf16.mxu1 %v3382_v0 }
0x2698   :  { %3020 = vmatpush3.bf16.msra.mxu1 %v3019_v2 }
0x2699   :  { %3021 = vmatprep.subr.bf16.mxu1 %v3382_v0 }
0x269c   :  { %3023 = vmatpush3.bf16.msra.mxu1 %v3022_v29 }
0x269d   :  { %v3222_v16 = vpop.eup %3221  ;;  %3024 = vmatprep.subr.bf16.mxu1 %v3382_v0 }
0x269e   :  { %2500 = vrot.lane.b32.xlu1 %v3222_v16, %s3385_s9  ;;  %v3224_v19 = vpop.eup %3223 }
0x269f   :  { %v2488_v20 = vadd.f32 1.0, %v3224_v19 }
0x26a0   :  { %3026 = vmatpush3.bf16.msra.mxu1 %v3025_v36 }
0x26a1   :  { %3225 = vrcp.f32 %v2488_v20 }
0x26ab   :  { %v3226_v21 = vpop.eup %3225 }
0x26ac   :  { %v2498_v49 = vmul.f32 %v3226_v21, %v2496_v26 }
0x2710   :  { %v2501_v22 = vpop.permute.xlu1 %2500 }
0x2711   :  { %v2503_v23 = vmul.f32 %v3226_v21, %v2501_v22 }
0x2713   :  { %2505 = vrot.lane.b32.xlu0 %v2503_v23, %s3385_s9 }
0x2717   :  { %1382 = vrot.lane.b32.xlu0 %v3761_v4, %s3385_s9 }
0x2785   :  { %v2506_v34 = vpop.permute.xlu0 %2505 }
0x2786   :  { %v2508_v40 = vadd.f32 %v2506_v34, %v2498_v49 }
0x2788   :  { %3227 = vtanh.f32 %v2508_v40 }
0x2789   :  { %v1383_v4 = vpop.permute.xlu0 %1382  ;;  %3229 = vpow2.f32 %v2691_v41 }
0x278a   :  { %1385 = vst.msk [vmem:[%s4000_s15 - $0x7] sm:$0x80] %vm1379_vm13, %v1383_v4 }
0x2792   :  { %v3228_v38 = vpop.eup %3227 }
0x2793   :  { %2511 = vrot.lane.b32.xlu1 %v3228_v38, %s3385_s9  ;;  %v3230_v42 = vpop.eup %3229 }
0x2794   :  { %v2489_v45 = vadd.f32 1.0, %v3230_v42 }
0x2796   :  { %3231 = vrcp.f32 %v2489_v45 }
0x2797   :  { %2519 = vrot.lane.b32.xlu1 %v2508_v40, %s3385_s9 }
0x27a0   :  { %v3232_v30 = vpop.eup %3231 }
0x2805   :  { %v2512_v47 = vpop.permute.xlu1 %2511 }
0x2806   :  { %v2514_v28 = vmul.f32 %v3232_v30, %v2512_v47 }
0x2808   :  { %2515 = vst.msk [vmem:[#allocation3] sm:$0x80] %vm1375_vm14, %v2514_v28 }
0x2809   :  { %2516 = vst.msk [vmem:[#allocation3 - $0x7] sm:$0x80] %vm1377_vm0, %v2514_v28  ;;  %v2520_v0 = vpop.permute.xlu1 %2519 }
0x280a   :  { %2517 = vst.msk [vmem:[%s3999_s14 - $0x6] sm:$0x80] %vm1379_vm13, %v2514_v28  ;;  %2522 = vst.msk [vmem:[%s4000_s15 - $0x6] sm:$0x80] %vm1379_vm13, %v2520_v0  ;;  %s3343_s14 = scalar_lea.vmem %s2620_s17, 128 }
0x280b   :  { %p3344_p12 = scmp.ne.s32.totalorder %s2620_s17, %s3343_s14  ;;  %p3349_p0 = scmp.lt.s32.totalorder %s3343_s14, %s3343_s14 }
0x280d   :  { %p3350_p1 = por %p3349_p0, %p3348_p13 }
0x280f   :  { %p3351_p2 = pnand %p3350_p1, %p3344_p12 }
0x2810   :  { %v2523_v31 = vld [vmem:[#allocation3] sm:$0xff] }
0x2811   :  { %2730 = vmatmul.mubr.msk.f32.vlgmr.msra.gmra.mrb[20].mxu1 %vm425_vm5, %v2523_v31 }
0x28e4   :  { %v2608_v37 = vpop.f32.mrb[20].mxu1 }
0x28e5   :  { %v2609_v43 = vadd.f32 %v2692_v51, %v2608_v37  ;;  %v2731_v5 = vpop.f32.mrb[21].mxu1 }
0x28e7   :  { %2612 = vst [vmem:[#allocation13] sm:$0xff] %v2609_v43 }
0x28e8   :  { %3354 = shalt.err (!%p3351_p2)
}
0x28e9   :  { %s3355_s27 = scalar_lea.hbm %s3998_s13, 128 }
0x28ea   :  { %p3356_p3 = scmp.ne.s32.totalorder %s3998_s13, %s3355_s27  ;;  %p3359_p4 = scmp.lt.u32.totalorder %s3355_s27, %s3998_s13 }
0x28ec   :  { %p3361_p5 = pnand %p3359_p4, %p3356_p3 }
0x28ee   :  { %3364 = shalt.err (!%p3361_p5)
}
0x28ef   :  { %2622 = dma.vmem_to_hbm [thread:$0]  %s2620_s17, 128, %s3998_s13, [#allocation6]  }
0x28f0   :  { %3371 = dma.done.wait [#allocation6], 128  }
0x28f1   :  { %3372 = vsyncadd [#allocation6], 4294967168 }
0x28f2   :  { %2634 = vsyncpa [#allocation5], 1 }
0x28f3   :  { %2635 = vsyncpa [#allocation8], 1 }
0x28f4   :  { %2636 = vsyncpa [#allocation11], 1 }
0x28f5   :  { %2637 = vsyncpa [#allocation6], 1 }

</bundles_post_ra>
